<compile_context>
chip_gen: v7x
topology: tpu7x:2x2x1
jax: 0.10.0
libtpu: 0.0.40
codegen_flags: <defaults>
</compile_context>

<pallas_src>
import jax
import jax.numpy as jnp
from jax import lax
from jax.experimental import pallas as pl
from jax.experimental.pallas import tpu as pltpu

# ---------------- model dimensions (small, deterministic) ----------------
N_NODES = 32          # nodes in the synthetic graph
D_NODE = 7            # raw node feature dim
E_FEATS = 4           # raw edge feature dim
E_EMB = 1             # edge embedding dim (must be 1: .view(N, 1) in reference)
IN_FEATS = D_NODE + E_EMB   # conv1 input dim (features_concat)
H_FEATS = 16
NUM_HEADS = 2
NUM_CLASSES = 8
NEG_SLOPE = 0.2       # DGL GATConv default leaky-relu slope
_NEG_BIG = -1e30
_TINY = 1e-30


# ---------------- in-kernel helpers ----------------
def _gat_head(feat, a_l, a_r, mask, adj, bias_row, *, apply_relu):
    """One GAT attention head on a dense masked graph.

    feat: (N, O) projected features; a_l/a_r: (1, O); mask: (N, N) bool;
    adj: (N, N) float {0,1}; bias_row: (1, O).
    """
    # el[u] = <feat[u], a_l>  — VPU multiply + lane reduce -> (N, 1) column
    el = jnp.sum(feat * a_l, axis=-1, keepdims=True)
    # er[v] = <feat[v], a_r>  — single MXU dot with lane-major (1, N) output
    er = lax.dot_general(a_r, feat, dimension_numbers=(((1,), (1,)), ((), ())),
                         preferred_element_type=jnp.float32)
    s = el + er                                     # s[u, v] = el[u] + er[v]
    s = jnp.where(s > 0, s, NEG_SLOPE * s)          # LeakyReLU(0.2)
    s = jnp.where(mask, s, _NEG_BIG)                # keep only real edges
    m = jnp.max(s, axis=0, keepdims=True)           # per-destination max   (1, N)
    p = jnp.exp(s - m) * adj                        # edge_softmax numerator
    denom = jnp.maximum(jnp.sum(p, axis=0, keepdims=True), _TINY)
    alpha = p * pl.reciprocal(denom, approx=True)   # softmax over in-edges (EUP recip)
    # rst[v] = sum_u alpha[u, v] * feat[u]
    rst = lax.dot_general(alpha, feat, dimension_numbers=(((0,), (0,)), ((), ())),
                          preferred_element_type=jnp.float32)
    rst = rst + bias_row
    if apply_relu:
        rst = jnp.maximum(rst, 0.0)
    return rst


# ---------------- fused forward kernel ----------------
def gat_fused_kernel(x_ref, w1_ref, w1e_ref,
                     e_feat_ref, w_edge_row_ref, b_edge_ref, dst_oh_ref,
                     al1_ref, ar1_ref, b1_ref, adj_ref,
                     w_inter_ref, b_inter_ref,
                     w2_ref, al2_ref, ar2_ref, b2_ref,
                     out_ref, a_scratch):
    n = x_ref.shape[0]

    adj = adj_ref[...]                               # (N, N)
    mask = adj > 0                                   # hoisted; shared by both GAT layers

    # ---- edge encoder + copy_e/sum, fused into conv1's projection ------------------
    # emb = relu(e_feat @ W_e + b_e)                 (E, 1)   — VPU mul + lane reduce
    emb = jnp.sum(e_feat_ref[...] * w_edge_row_ref[...], axis=-1, keepdims=True)
    emb = jnp.maximum(emb + b_edge_ref[...], 0.0)
    # x_concat @ W1 = in_feat_pad @ W1 + dst_onehot^T @ (emb * W1[D_NODE])
    emb_w = emb * w1e_ref[...]                       # (E, H*O)
    feat_all = jnp.dot(x_ref[...], w1_ref[...],
                       preferred_element_type=jnp.float32)          # (N, H*O)
    feat_all = feat_all + lax.dot_general(
        dst_oh_ref[...], emb_w,
        dimension_numbers=(((0,), (0,)), ((), ())),
        preferred_element_type=jnp.float32)                         # (N, H*O)

    # ---- conv1: 2-head GAT, fused ReLU; one wide projection, lane-sliced per head --
    for h in range(NUM_HEADS):                       # static unroll
        feat_h = feat_all[:, h * H_FEATS:(h + 1) * H_FEATS]         # (N, O)
        rst = _gat_head(feat_h, al1_ref[h:h + 1, :], ar1_ref[h:h + 1, :],
                        mask, adj, b1_ref[h:h + 1, :], apply_relu=True)
        # head-major row stack == flattened torch permute(1,0,2)
        a_scratch[h * n:(h + 1) * n, :] = rst

    # ---- torch: h.permute(1,0,2).reshape(N, H*O)  ->  row i = [A[2i], A[2i+1]] -----
    rows = lax.broadcasted_iota(jnp.int32, (n, NUM_HEADS * n), 0)
    cols = lax.broadcasted_iota(jnp.int32, (n, NUM_HEADS * n), 1)
    sel_even = (cols == 2 * rows).astype(jnp.float32)                # picks A[2i]
    sel_odd = (cols == 2 * rows + 1).astype(jnp.float32)             # picks A[2i+1]
    a_all = a_scratch[...]                                           # (H*N, O)
    even = jnp.dot(sel_even, a_all, preferred_element_type=jnp.float32)  # (N, O)
    odd = jnp.dot(sel_odd, a_all, preferred_element_type=jnp.float32)    # (N, O)

    # ---- inter Linear: [even | odd] @ W_inter + b = even@W_top + odd@W_bot + b -----
    w_inter = w_inter_ref[...]
    h_mid = jnp.dot(even, w_inter[:H_FEATS, :], preferred_element_type=jnp.float32)
    h_mid = h_mid + jnp.dot(odd, w_inter[H_FEATS:, :],
                            preferred_element_type=jnp.float32)
    h_mid = h_mid + b_inter_ref[...]                                 # (N, H_FEATS)

    # ---- conv2: single-head GAT, no activation -------------------------------------
    feat2 = jnp.dot(h_mid, w2_ref[...], preferred_element_type=jnp.float32)  # (N, C)
    rst2 = _gat_head(feat2, al2_ref[...], ar2_ref[...], mask, adj,
                     b2_ref[...], apply_relu=False)
    out_ref[...] = rst2        # 1-head permute/reshape is the identity on (N, C)


# ---------------- forward pass: ONE pallas_call, no grid ----------------
def gat_model_forward(params, adj, dst_onehot, in_feat, e_feat):
    n = in_feat.shape[0]

    # zero-pad node features to IN_FEATS so conv1's projection has an aligned K=8;
    # the padded column contributes nothing (its W1 row is applied via the edge term).
    x_pad = jnp.concatenate(
        [in_feat, jnp.zeros((n, E_EMB), jnp.float32)], axis=-1)     # (N, IN_FEATS)
    w_edge_row = params["w_edge"].T                                  # (E_EMB, E_FEATS) == (1, 4)
    w1_edge = params["w1"][D_NODE:, :]                               # (E_EMB, H*O)

    args = (x_pad, params["w1"], w1_edge,
            e_feat, w_edge_row, params["b_edge"], dst_onehot,
            params["al1"], params["ar1"], params["b1"], adj,
            params["w_inter"], params["b_inter"],
            params["w2"], params["al2"], params["ar2"], params["b2"])

    vmem = lambda: pl.BlockSpec(memory_space=pltpu.MemorySpace.VMEM)
    return pl.pallas_call(
        gat_fused_kernel,
        out_shape=jax.ShapeDtypeStruct((n, NUM_CLASSES), jnp.float32),
        in_specs=[vmem() for _ in args],
        out_specs=vmem(),
        scratch_shapes=[pltpu.VMEM((NUM_HEADS * n, H_FEATS), jnp.float32)],
    )(*args)


# ---------------- deterministic setup ----------------
def make_params(key):
    ks = jax.random.split(key, 10)
    p = {
        "w_edge": 0.2 * jax.random.normal(ks[0], (E_FEATS, E_EMB), jnp.float32),
        "b_edge": 0.1 * jax.random.normal(ks[1], (1, E_EMB), jnp.float32),
        "w1": 0.2 * jax.random.normal(ks[2], (IN_FEATS, NUM_HEADS * H_FEATS), jnp.float32),
        "al1": 0.2 * jax.random.normal(ks[3], (NUM_HEADS, H_FEATS), jnp.float32),
        "ar1": 0.2 * jax.random.normal(ks[4], (NUM_HEADS, H_FEATS), jnp.float32),
        "b1": jnp.zeros((NUM_HEADS, H_FEATS), jnp.float32),          # DGL inits bias to 0
        "w_inter": 0.2 * jax.random.normal(ks[5], (NUM_HEADS * H_FEATS, H_FEATS), jnp.float32),
        "b_inter": 0.1 * jax.random.normal(ks[6], (1, H_FEATS), jnp.float32),
        "w2": 0.2 * jax.random.normal(ks[7], (H_FEATS, NUM_CLASSES), jnp.float32),
        "al2": 0.2 * jax.random.normal(ks[8], (1, NUM_CLASSES), jnp.float32),
        "ar2": 0.2 * jax.random.normal(ks[9], (1, NUM_CLASSES), jnp.float32),
        "b2": jnp.zeros((1, NUM_CLASSES), jnp.float32),
    }
    return p


def make_graph(n):
    # deterministic graph: self-loops + ring(+1) + skip(+5); every node has in-degree >= 1
    src, dst = [], []
    for i in range(n):
        for off in (0, 1, 5):
            src.append(i)
            dst.append((i + off) % n)
    src = jnp.array(src, jnp.int32)
    dst = jnp.array(dst, jnp.int32)
    adj = jnp.zeros((n, n), jnp.float32).at[src, dst].set(1.0)
    dst_onehot = jax.nn.one_hot(dst, n, dtype=jnp.float32)           # (E, N)
    return adj, dst_onehot, src.shape[0]


if __name__ == "__main__":
    key = jax.random.PRNGKey(0)
    k_param, k_x, k_e = jax.random.split(key, 3)

    params = make_params(k_param)
    adj, dst_onehot, num_edges = make_graph(N_NODES)

    in_feat = jax.random.normal(k_x, (N_NODES, D_NODE), jnp.float32)
    e_feat = jax.random.normal(k_e, (num_edges, E_FEATS), jnp.float32)

    out = jax.jit(gat_model_forward)(params, adj, dst_onehot, in_feat, e_feat)
    out = jax.block_until_ready(out)

    assert out.shape == (N_NODES, NUM_CLASSES), out.shape
    assert bool(jnp.all(jnp.isfinite(out)))
    print("KERNEL_OK")
</pallas_src>

<mosaic_0001>
module attributes {stable_mosaic.version = 11 : i64} {
  func.func @gat_fused_kernel(%arg0: memref<32x8xf32, #tpu.memory_space<vmem>>, %arg1: memref<8x32xf32, #tpu.memory_space<vmem>>, %arg2: memref<1x32xf32, #tpu.memory_space<vmem>>, %arg3: memref<96x4xf32, #tpu.memory_space<vmem>>, %arg4: memref<1x4xf32, #tpu.memory_space<vmem>>, %arg5: memref<1x1xf32, #tpu.memory_space<vmem>>, %arg6: memref<96x32xf32, #tpu.memory_space<vmem>>, %arg7: memref<2x16xf32, #tpu.memory_space<vmem>>, %arg8: memref<2x16xf32, #tpu.memory_space<vmem>>, %arg9: memref<2x16xf32, #tpu.memory_space<vmem>>, %arg10: memref<32x32xf32, #tpu.memory_space<vmem>>, %arg11: memref<32x16xf32, #tpu.memory_space<vmem>>, %arg12: memref<1x16xf32, #tpu.memory_space<vmem>>, %arg13: memref<16x8xf32, #tpu.memory_space<vmem>>, %arg14: memref<1x8xf32, #tpu.memory_space<vmem>>, %arg15: memref<1x8xf32, #tpu.memory_space<vmem>>, %arg16: memref<1x8xf32, #tpu.memory_space<vmem>>, %arg17: memref<32x8xf32, #tpu.memory_space<vmem>>, %arg18: memref<64x16xf32, #tpu.memory_space<vmem>>) attributes {dimension_semantics = [], scalar_prefetch = 0 : i64, scratch_operands = 1 : i64, tpu.core_type = #tpu.core_type<tc>} {
    %c0 = arith.constant 0 : index
    %c0_0 = arith.constant 0 : index
    %0 = vector.load %arg10[%c0, %c0_0] : memref<32x32xf32, #tpu.memory_space<vmem>>, vector<32x32xf32>
    %cst = arith.constant 0.000000e+00 : f32
    %1 = vector.broadcast %cst : f32 to vector<32x32xf32>
    %2 = arith.cmpf ogt, %0, %1 : vector<32x32xf32>
    %c0_1 = arith.constant 0 : index
    %c0_2 = arith.constant 0 : index
    %3 = vector.load %arg3[%c0_1, %c0_2] : memref<96x4xf32, #tpu.memory_space<vmem>>, vector<96x4xf32>
    %c0_3 = arith.constant 0 : index
    %c0_4 = arith.constant 0 : index
    %4 = vector.load %arg4[%c0_3, %c0_4] : memref<1x4xf32, #tpu.memory_space<vmem>>, vector<1x4xf32>
    %5 = vector.broadcast %4 : vector<1x4xf32> to vector<96x4xf32>
    %6 = arith.mulf %3, %5 : vector<96x4xf32>
    %cst_5 = arith.constant dense<0.000000e+00> : vector<96xf32>
    %7 = vector.multi_reduction <add>, %6, %cst_5 [1] : vector<96x4xf32> to vector<96xf32>
    %8 = vector.shape_cast %7 : vector<96xf32> to vector<96x1xf32>
    %c0_6 = arith.constant 0 : index
    %c0_7 = arith.constant 0 : index
    %9 = vector.load %arg5[%c0_6, %c0_7] : memref<1x1xf32, #tpu.memory_space<vmem>>, vector<1x1xf32>
    %10 = vector.broadcast %9 : vector<1x1xf32> to vector<96x1xf32>
    %11 = arith.addf %8, %10 : vector<96x1xf32>
    %cst_8 = arith.constant 0.000000e+00 : f32
    %12 = vector.broadcast %cst_8 : f32 to vector<96x1xf32>
    %13 = arith.maximumf %11, %12 : vector<96x1xf32>
    %c0_9 = arith.constant 0 : index
    %c0_10 = arith.constant 0 : index
    %14 = vector.load %arg2[%c0_9, %c0_10] : memref<1x32xf32, #tpu.memory_space<vmem>>, vector<1x32xf32>
    %15 = vector.broadcast %13 : vector<96x1xf32> to vector<96x32xf32>
    %16 = vector.broadcast %14 : vector<1x32xf32> to vector<96x32xf32>
    %17 = arith.mulf %15, %16 : vector<96x32xf32>
    %c0_11 = arith.constant 0 : index
    %c0_12 = arith.constant 0 : index
    %18 = vector.load %arg0[%c0_11, %c0_12] : memref<32x8xf32, #tpu.memory_space<vmem>>, vector<32x8xf32>
    %c0_13 = arith.constant 0 : index
    %c0_14 = arith.constant 0 : index
    %19 = vector.load %arg1[%c0_13, %c0_14] : memref<8x32xf32, #tpu.memory_space<vmem>>, vector<8x32xf32>
    %cst_15 = arith.constant dense<0.000000e+00> : vector<32x32xf32>
    %20 = tpu.matmul %18, %19, %cst_15 {dimension_numbers = #tpu.dot_dimension_numbers<[1], [0], [0], [1], [0, 0, 1, 1], [], []>} : vector<32x8xf32>, vector<8x32xf32>, vector<32x32xf32> -> vector<32x32xf32>
    %c0_16 = arith.constant 0 : index
    %c0_17 = arith.constant 0 : index
    %21 = vector.load %arg6[%c0_16, %c0_17] : memref<96x32xf32, #tpu.memory_space<vmem>>, vector<96x32xf32>
    %cst_18 = arith.constant dense<0.000000e+00> : vector<32x32xf32>
    %22 = tpu.matmul %21, %17, %cst_18 {dimension_numbers = #tpu.dot_dimension_numbers<[0], [0], [1], [1], [0, 1, 1, 1], [], []>} : vector<96x32xf32>, vector<96x32xf32>, vector<32x32xf32> -> vector<32x32xf32>
    %23 = arith.addf %20, %22 : vector<32x32xf32>
    %24 = vector.extract_strided_slice %23 {offsets = [0, 0], sizes = [32, 16], strides = [1, 1]} : vector<32x32xf32> to vector<32x16xf32>
    %c0_19 = arith.constant 0 : index
    %c0_20 = arith.constant 0 : index
    %25 = vector.load %arg7[%c0_19, %c0_20] : memref<2x16xf32, #tpu.memory_space<vmem>>, vector<1x16xf32>
    %c0_21 = arith.constant 0 : index
    %c0_22 = arith.constant 0 : index
    %26 = vector.load %arg8[%c0_21, %c0_22] : memref<2x16xf32, #tpu.memory_space<vmem>>, vector<1x16xf32>
    %c0_23 = arith.constant 0 : index
    %c0_24 = arith.constant 0 : index
    %27 = vector.load %arg9[%c0_23, %c0_24] : memref<2x16xf32, #tpu.memory_space<vmem>>, vector<1x16xf32>
    %28 = vector.broadcast %25 : vector<1x16xf32> to vector<32x16xf32>
    %29 = arith.mulf %24, %28 : vector<32x16xf32>
    %cst_25 = arith.constant dense<0.000000e+00> : vector<32xf32>
    %30 = vector.multi_reduction <add>, %29, %cst_25 [1] : vector<32x16xf32> to vector<32xf32>
    %31 = vector.shape_cast %30 : vector<32xf32> to vector<32x1xf32>
    %cst_26 = arith.constant dense<0.000000e+00> : vector<1x32xf32>
    %32 = tpu.matmul %26, %24, %cst_26 {dimension_numbers = #tpu.dot_dimension_numbers<[1], [1], [0], [0], [0, 0, 1, 0], [], []>} : vector<1x16xf32>, vector<32x16xf32>, vector<1x32xf32> -> vector<1x32xf32>
    %33 = vector.broadcast %31 : vector<32x1xf32> to vector<32x32xf32>
    %34 = vector.broadcast %32 : vector<1x32xf32> to vector<32x32xf32>
    %35 = arith.addf %33, %34 : vector<32x32xf32>
    %cst_27 = arith.constant 0.000000e+00 : f32
    %36 = vector.broadcast %cst_27 : f32 to vector<32x32xf32>
    %37 = arith.cmpf ogt, %35, %36 : vector<32x32xf32>
    %cst_28 = arith.constant 2.000000e-01 : f32
    %38 = vector.broadcast %cst_28 : f32 to vector<32x32xf32>
    %39 = arith.mulf %38, %35 : vector<32x32xf32>
    %40 = arith.select %37, %35, %39 : vector<32x32xi1>, vector<32x32xf32>
    %cst_29 = arith.constant -1.000000e+30 : f32
    %41 = vector.broadcast %cst_29 : f32 to vector<32x32xf32>
    %42 = arith.select %2, %40, %41 : vector<32x32xi1>, vector<32x32xf32>
    %cst_30 = arith.constant dense<0xFF800000> : vector<32xf32>
    %43 = vector.multi_reduction <maximumf>, %42, %cst_30 [0] : vector<32x32xf32> to vector<32xf32>
    %44 = vector.shape_cast %43 : vector<32xf32> to vector<1x32xf32>
    %45 = vector.broadcast %44 : vector<1x32xf32> to vector<32x32xf32>
    %46 = arith.subf %42, %45 : vector<32x32xf32>
    %47 = math.exp %46 : vector<32x32xf32>
    %48 = arith.mulf %47, %0 : vector<32x32xf32>
    %cst_31 = arith.constant dense<0.000000e+00> : vector<32xf32>
    %49 = vector.multi_reduction <add>, %48, %cst_31 [0] : vector<32x32xf32> to vector<32xf32>
    %50 = vector.shape_cast %49 : vector<32xf32> to vector<1x32xf32>
    %cst_32 = arith.constant 1.000000e-30 : f32
    %51 = vector.broadcast %cst_32 : f32 to vector<1x32xf32>
    %52 = arith.maximumf %50, %51 : vector<1x32xf32>
    %53 = tpu.reciprocal %52 {approx = true} : vector<1x32xf32> -> vector<1x32xf32>
    %54 = vector.broadcast %53 : vector<1x32xf32> to vector<32x32xf32>
    %55 = arith.mulf %48, %54 : vector<32x32xf32>
    %cst_33 = arith.constant dense<0.000000e+00> : vector<32x16xf32>
    %56 = tpu.matmul %55, %24, %cst_33 {dimension_numbers = #tpu.dot_dimension_numbers<[0], [0], [1], [1], [0, 1, 1, 1], [], []>} : vector<32x32xf32>, vector<32x16xf32>, vector<32x16xf32> -> vector<32x16xf32>
    %57 = vector.broadcast %27 : vector<1x16xf32> to vector<32x16xf32>
    %58 = arith.addf %56, %57 : vector<32x16xf32>
    %cst_34 = arith.constant 0.000000e+00 : f32
    %59 = vector.broadcast %cst_34 : f32 to vector<32x16xf32>
    %60 = arith.maximumf %58, %59 : vector<32x16xf32>
    %c0_35 = arith.constant 0 : index
    %c0_36 = arith.constant 0 : index
    %61 = vector.load %arg18[%c0_35, %c0_36] : memref<64x16xf32, #tpu.memory_space<vmem>>, vector<32x16xf32>
    tpu.vector_store %arg18[%c0_35, %c0_36], %60 {strides = array<i32>} : memref<64x16xf32, #tpu.memory_space<vmem>>, vector<32x16xf32>,
    %62 = vector.extract_strided_slice %23 {offsets = [0, 16], sizes = [32, 16], strides = [1, 1]} : vector<32x32xf32> to vector<32x16xf32>
    %c1 = arith.constant 1 : index
    %c0_37 = arith.constant 0 : index
    %63 = vector.load %arg7[%c1, %c0_37] : memref<2x16xf32, #tpu.memory_space<vmem>>, vector<1x16xf32>
    %c1_38 = arith.constant 1 : index
    %c0_39 = arith.constant 0 : index
    %64 = vector.load %arg8[%c1_38, %c0_39] : memref<2x16xf32, #tpu.memory_space<vmem>>, vector<1x16xf32>
    %c1_40 = arith.constant 1 : index
    %c0_41 = arith.constant 0 : index
    %65 = vector.load %arg9[%c1_40, %c0_41] : memref<2x16xf32, #tpu.memory_space<vmem>>, vector<1x16xf32>
    %66 = vector.broadcast %63 : vector<1x16xf32> to vector<32x16xf32>
    %67 = arith.mulf %62, %66 : vector<32x16xf32>
    %cst_42 = arith.constant dense<0.000000e+00> : vector<32xf32>
    %68 = vector.multi_reduction <add>, %67, %cst_42 [1] : vector<32x16xf32> to vector<32xf32>
    %69 = vector.shape_cast %68 : vector<32xf32> to vector<32x1xf32>
    %cst_43 = arith.constant dense<0.000000e+00> : vector<1x32xf32>
    %70 = tpu.matmul %64, %62, %cst_43 {dimension_numbers = #tpu.dot_dimension_numbers<[1], [1], [0], [0], [0, 0, 1, 0], [], []>} : vector<1x16xf32>, vector<32x16xf32>, vector<1x32xf32> -> vector<1x32xf32>
    %71 = vector.broadcast %69 : vector<32x1xf32> to vector<32x32xf32>
    %72 = vector.broadcast %70 : vector<1x32xf32> to vector<32x32xf32>
    %73 = arith.addf %71, %72 : vector<32x32xf32>
    %cst_44 = arith.constant 0.000000e+00 : f32
    %74 = vector.broadcast %cst_44 : f32 to vector<32x32xf32>
    %75 = arith.cmpf ogt, %73, %74 : vector<32x32xf32>
    %cst_45 = arith.constant 2.000000e-01 : f32
    %76 = vector.broadcast %cst_45 : f32 to vector<32x32xf32>
    %77 = arith.mulf %76, %73 : vector<32x32xf32>
    %78 = arith.select %75, %73, %77 : vector<32x32xi1>, vector<32x32xf32>
    %cst_46 = arith.constant -1.000000e+30 : f32
    %79 = vector.broadcast %cst_46 : f32 to vector<32x32xf32>
    %80 = arith.select %2, %78, %79 : vector<32x32xi1>, vector<32x32xf32>
    %cst_47 = arith.constant dense<0xFF800000> : vector<32xf32>
    %81 = vector.multi_reduction <maximumf>, %80, %cst_47 [0] : vector<32x32xf32> to vector<32xf32>
    %82 = vector.shape_cast %81 : vector<32xf32> to vector<1x32xf32>
    %83 = vector.broadcast %82 : vector<1x32xf32> to vector<32x32xf32>
    %84 = arith.subf %80, %83 : vector<32x32xf32>
    %85 = math.exp %84 : vector<32x32xf32>
    %86 = arith.mulf %85, %0 : vector<32x32xf32>
    %cst_48 = arith.constant dense<0.000000e+00> : vector<32xf32>
    %87 = vector.multi_reduction <add>, %86, %cst_48 [0] : vector<32x32xf32> to vector<32xf32>
    %88 = vector.shape_cast %87 : vector<32xf32> to vector<1x32xf32>
    %cst_49 = arith.constant 1.000000e-30 : f32
    %89 = vector.broadcast %cst_49 : f32 to vector<1x32xf32>
    %90 = arith.maximumf %88, %89 : vector<1x32xf32>
    %91 = tpu.reciprocal %90 {approx = true} : vector<1x32xf32> -> vector<1x32xf32>
    %92 = vector.broadcast %91 : vector<1x32xf32> to vector<32x32xf32>
    %93 = arith.mulf %86, %92 : vector<32x32xf32>
    %cst_50 = arith.constant dense<0.000000e+00> : vector<32x16xf32>
    %94 = tpu.matmul %93, %62, %cst_50 {dimension_numbers = #tpu.dot_dimension_numbers<[0], [0], [1], [1], [0, 1, 1, 1], [], []>} : vector<32x32xf32>, vector<32x16xf32>, vector<32x16xf32> -> vector<32x16xf32>
    %95 = vector.broadcast %65 : vector<1x16xf32> to vector<32x16xf32>
    %96 = arith.addf %94, %95 : vector<32x16xf32>
    %cst_51 = arith.constant 0.000000e+00 : f32
    %97 = vector.broadcast %cst_51 : f32 to vector<32x16xf32>
    %98 = arith.maximumf %96, %97 : vector<32x16xf32>
    %c32 = arith.constant 32 : index
    %c0_52 = arith.constant 0 : index
    %99 = vector.load %arg18[%c32, %c0_52] : memref<64x16xf32, #tpu.memory_space<vmem>>, vector<32x16xf32>
    tpu.vector_store %arg18[%c32, %c0_52], %98 {strides = array<i32>} : memref<64x16xf32, #tpu.memory_space<vmem>>, vector<32x16xf32>,
    %100 = tpu.iota {dimensions = array<i32: 0>} : vector<32x64xi32>
    %101 = tpu.iota {dimensions = array<i32: 1>} : vector<32x64xi32>
    %c2_i32 = arith.constant 2 : i32
    %102 = vector.broadcast %c2_i32 : i32 to vector<32x64xi32>
    %103 = arith.muli %102, %100 : vector<32x64xi32>
    %104 = arith.cmpi eq, %101, %103 : vector<32x64xi32>
    %105 = arith.extui %104 : vector<32x64xi1> to vector<32x64xi32>
    %106 = arith.sitofp %105 : vector<32x64xi32> to vector<32x64xf32>
    %c2_i32_53 = arith.constant 2 : i32
    %107 = vector.broadcast %c2_i32_53 : i32 to vector<32x64xi32>
    %108 = arith.muli %107, %100 : vector<32x64xi32>
    %c1_i32 = arith.constant 1 : i32
    %109 = vector.broadcast %c1_i32 : i32 to vector<32x64xi32>
    %110 = arith.addi %108, %109 : vector<32x64xi32>
    %111 = arith.cmpi eq, %101, %110 : vector<32x64xi32>
    %112 = arith.extui %111 : vector<32x64xi1> to vector<32x64xi32>
    %113 = arith.sitofp %112 : vector<32x64xi32> to vector<32x64xf32>
    %c0_54 = arith.constant 0 : index
    %c0_55 = arith.constant 0 : index
    %114 = vector.load %arg18[%c0_54, %c0_55] : memref<64x16xf32, #tpu.memory_space<vmem>>, vector<64x16xf32>
    %cst_56 = arith.constant dense<0.000000e+00> : vector<32x16xf32>
    %115 = tpu.matmul %106, %114, %cst_56 {dimension_numbers = #tpu.dot_dimension_numbers<[1], [0], [0], [1], [0, 0, 1, 1], [], []>} : vector<32x64xf32>, vector<64x16xf32>, vector<32x16xf32> -> vector<32x16xf32>
    %cst_57 = arith.constant dense<0.000000e+00> : vector<32x16xf32>
    %116 = tpu.matmul %113, %114, %cst_57 {dimension_numbers = #tpu.dot_dimension_numbers<[1], [0], [0], [1], [0, 0, 1, 1], [], []>} : vector<32x64xf32>, vector<64x16xf32>, vector<32x16xf32> -> vector<32x16xf32>
    %c0_58 = arith.constant 0 : index
    %c0_59 = arith.constant 0 : index
    %117 = vector.load %arg11[%c0_58, %c0_59] : memref<32x16xf32, #tpu.memory_space<vmem>>, vector<32x16xf32>
    %118 = vector.extract_strided_slice %117 {offsets = [0, 0], sizes = [16, 16], strides = [1, 1]} : vector<32x16xf32> to vector<16x16xf32>
    %cst_60 = arith.constant dense<0.000000e+00> : vector<32x16xf32>
    %119 = tpu.matmul %115, %118, %cst_60 {dimension_numbers = #tpu.dot_dimension_numbers<[1], [0], [0], [1], [0, 0, 1, 1], [], []>} : vector<32x16xf32>, vector<16x16xf32>, vector<32x16xf32> -> vector<32x16xf32>
    %120 = vector.extract_strided_slice %117 {offsets = [16, 0], sizes = [16, 16], strides = [1, 1]} : vector<32x16xf32> to vector<16x16xf32>
    %cst_61 = arith.constant dense<0.000000e+00> : vector<32x16xf32>
    %121 = tpu.matmul %116, %120, %cst_61 {dimension_numbers = #tpu.dot_dimension_numbers<[1], [0], [0], [1], [0, 0, 1, 1], [], []>} : vector<32x16xf32>, vector<16x16xf32>, vector<32x16xf32> -> vector<32x16xf32>
    %122 = arith.addf %119, %121 : vector<32x16xf32>
    %c0_62 = arith.constant 0 : index
    %c0_63 = arith.constant 0 : index
    %123 = vector.load %arg12[%c0_62, %c0_63] : memref<1x16xf32, #tpu.memory_space<vmem>>, vector<1x16xf32>
    %124 = vector.broadcast %123 : vector<1x16xf32> to vector<32x16xf32>
    %125 = arith.addf %122, %124 : vector<32x16xf32>
    %c0_64 = arith.constant 0 : index
    %c0_65 = arith.constant 0 : index
    %126 = vector.load %arg13[%c0_64, %c0_65] : memref<16x8xf32, #tpu.memory_space<vmem>>, vector<16x8xf32>
    %cst_66 = arith.constant dense<0.000000e+00> : vector<32x8xf32>
    %127 = tpu.matmul %125, %126, %cst_66 {dimension_numbers = #tpu.dot_dimension_numbers<[1], [0], [0], [1], [0, 0, 1, 1], [], []>} : vector<32x16xf32>, vector<16x8xf32>, vector<32x8xf32> -> vector<32x8xf32>
    %c0_67 = arith.constant 0 : index
    %c0_68 = arith.constant 0 : index
    %128 = vector.load %arg14[%c0_67, %c0_68] : memref<1x8xf32, #tpu.memory_space<vmem>>, vector<1x8xf32>
    %c0_69 = arith.constant 0 : index
    %c0_70 = arith.constant 0 : index
    %129 = vector.load %arg15[%c0_69, %c0_70] : memref<1x8xf32, #tpu.memory_space<vmem>>, vector<1x8xf32>
    %c0_71 = arith.constant 0 : index
    %c0_72 = arith.constant 0 : index
    %130 = vector.load %arg16[%c0_71, %c0_72] : memref<1x8xf32, #tpu.memory_space<vmem>>, vector<1x8xf32>
    %131 = vector.broadcast %128 : vector<1x8xf32> to vector<32x8xf32>
    %132 = arith.mulf %127, %131 : vector<32x8xf32>
    %cst_73 = arith.constant dense<0.000000e+00> : vector<32xf32>
    %133 = vector.multi_reduction <add>, %132, %cst_73 [1] : vector<32x8xf32> to vector<32xf32>
    %134 = vector.shape_cast %133 : vector<32xf32> to vector<32x1xf32>
    %cst_74 = arith.constant dense<0.000000e+00> : vector<1x32xf32>
    %135 = tpu.matmul %129, %127, %cst_74 {dimension_numbers = #tpu.dot_dimension_numbers<[1], [1], [0], [0], [0, 0, 1, 0], [], []>} : vector<1x8xf32>, vector<32x8xf32>, vector<1x32xf32> -> vector<1x32xf32>
    %136 = vector.broadcast %134 : vector<32x1xf32> to vector<32x32xf32>
    %137 = vector.broadcast %135 : vector<1x32xf32> to vector<32x32xf32>
    %138 = arith.addf %136, %137 : vector<32x32xf32>
    %cst_75 = arith.constant 0.000000e+00 : f32
    %139 = vector.broadcast %cst_75 : f32 to vector<32x32xf32>
    %140 = arith.cmpf ogt, %138, %139 : vector<32x32xf32>
    %cst_76 = arith.constant 2.000000e-01 : f32
    %141 = vector.broadcast %cst_76 : f32 to vector<32x32xf32>
    %142 = arith.mulf %141, %138 : vector<32x32xf32>
    %143 = arith.select %140, %138, %142 : vector<32x32xi1>, vector<32x32xf32>
    %cst_77 = arith.constant -1.000000e+30 : f32
    %144 = vector.broadcast %cst_77 : f32 to vector<32x32xf32>
    %145 = arith.select %2, %143, %144 : vector<32x32xi1>, vector<32x32xf32>
    %cst_78 = arith.constant dense<0xFF800000> : vector<32xf32>
    %146 = vector.multi_reduction <maximumf>, %145, %cst_78 [0] : vector<32x32xf32> to vector<32xf32>
    %147 = vector.shape_cast %146 : vector<32xf32> to vector<1x32xf32>
    %148 = vector.broadcast %147 : vector<1x32xf32> to vector<32x32xf32>
    %149 = arith.subf %145, %148 : vector<32x32xf32>
    %150 = math.exp %149 : vector<32x32xf32>
    %151 = arith.mulf %150, %0 : vector<32x32xf32>
    %cst_79 = arith.constant dense<0.000000e+00> : vector<32xf32>
    %152 = vector.multi_reduction <add>, %151, %cst_79 [0] : vector<32x32xf32> to vector<32xf32>
    %153 = vector.shape_cast %152 : vector<32xf32> to vector<1x32xf32>
    %cst_80 = arith.constant 1.000000e-30 : f32
    %154 = vector.broadcast %cst_80 : f32 to vector<1x32xf32>
    %155 = arith.maximumf %153, %154 : vector<1x32xf32>
    %156 = tpu.reciprocal %155 {approx = true} : vector<1x32xf32> -> vector<1x32xf32>
    %157 = vector.broadcast %156 : vector<1x32xf32> to vector<32x32xf32>
    %158 = arith.mulf %151, %157 : vector<32x32xf32>
    %cst_81 = arith.constant dense<0.000000e+00> : vector<32x8xf32>
    %159 = tpu.matmul %158, %127, %cst_81 {dimension_numbers = #tpu.dot_dimension_numbers<[0], [0], [1], [1], [0, 1, 1, 1], [], []>} : vector<32x32xf32>, vector<32x8xf32>, vector<32x8xf32> -> vector<32x8xf32>
    %160 = vector.broadcast %130 : vector<1x8xf32> to vector<32x8xf32>
    %161 = arith.addf %159, %160 : vector<32x8xf32>
    %c0_82 = arith.constant 0 : index
    %c0_83 = arith.constant 0 : index
    %162 = vector.load %arg17[%c0_82, %c0_83] : memref<32x8xf32, #tpu.memory_space<vmem>>, vector<32x8xf32>
    tpu.vector_store %arg17[%c0_82, %c0_83], %161 {strides = array<i32>} : memref<32x8xf32, #tpu.memory_space<vmem>>, vector<32x8xf32>,
    return
  }
}

</mosaic_0001>

<bundles_post_ra>
// kernel: gat_model_forward.1
= control target key start
LH: loop header
LB: loop body
LE: loop exit
PB: predicated region body
PF: predicated region fallthrough
CT: control target
= control target key end

     0   :  { %vm97_vm0 = vcmask 31744   ;;  %v2570_v37 = vmov 0   ;;  %vm391_vm1 = vcmask 64512   ;;  %vm293_vm2 = vcmask 785408   ;;  %s3089_s3 = inlined_call_operand.vmem [shape: f32[96,4], index: 3, kind: input, shape index: {}]   ;;  %s3090_s4 = inlined_call_operand.vmem [shape: f32[1,4], index: 4, kind: input, shape index: {}]   ;;  %s3091_s5 = inlined_call_operand.<no memory space> [shape: f32[1,1], index: 5, kind: input, shape index: {}]   ;;  %s3092_s6 = inlined_call_operand.vmem [shape: f32[96,32], index: 6, kind: input, shape index: {}]   ;;  %s3093_s1 = inlined_call_operand.vmem [shape: f32[8,32], index: 1, kind: input, shape index: {}]   ;;  %s3094_s0 = inlined_call_operand.vmem [shape: f32[32,8], index: 0, kind: input, shape index: {}]   ;;  %s3095_s2 = inlined_call_operand.vmem [shape: f32[1,32], index: 2, kind: input, shape index: {}]   ;;  %s3096_s7 = inlined_call_operand.vmem [shape: f32[2,16], index: 7, kind: input, shape index: {}]   ;;  %s3097_s8 = inlined_call_operand.vmem [shape: f32[2,16], index: 8, kind: input, shape index: {}]   ;;  %s3098_s10 = inlined_call_operand.vmem [shape: f32[32,32], index: 10, kind: input, shape index: {}]   ;;  %s3099_s9 = inlined_call_operand.vmem [shape: f32[2,16], index: 9, kind: input, shape index: {}]   ;;  %s3100_s11 = inlined_call_operand.vmem [shape: f32[32,16], index: 11, kind: input, shape index: {}]   ;;  %s3101_s13 = inlined_call_operand.vmem [shape: f32[16,8], index: 13, kind: input, shape index: {}]   ;;  %s3102_s12 = inlined_call_operand.vmem [shape: f32[1,16], index: 12, kind: input, shape index: {}]   ;;  %s3103_s14 = inlined_call_operand.vmem [shape: f32[1,8], index: 14, kind: input, shape index: {}]   ;;  %s3104_s15 = inlined_call_operand.vmem [shape: f32[1,8], index: 15, kind: input, shape index: {}]   ;;  %s3105_s16 = inlined_call_operand.vmem [shape: f32[1,8], index: 16, kind: input, shape index: {}]   ;;  %s3106_s17 = inlined_call_operand.vmem [shape: f32[32,8], index: 17, kind: output, shape index: {}]  }
   0x1   :  { %3109 = sst [smem:[#allocation4_spill]] %s3089_s3  ;;  %v22_v3 = vstv %s3091_s5  ;;  %2528 = vset.pattern.permute.xlu0 %v2570_v37  ;;  %2529 = vset.pattern.permute.xlu1 %v2570_v37  ;;  %vm2573_vm3 = vmmov 0   ;;  %vm500_vm4 = vcmask 130048   ;;  %vm622_vm14 = vcmask 261120  }
   0x2   :  { %3110 = sst [smem:[#allocation5_spill]] %s3090_s4  ;;  %s3112_s26 = sld [smem:[#allocation4_spill]]  ;;  %23 = vst [vmem:[#allocation3] sm:$0x1] %v22_v3  ;;  %vm2794_vm5 = vmpackc.low %vm500_vm4, %vm500_vm4 }
   0x3   :  { %3111 = sst [smem:[#allocation6_spill]] %s3101_s13  ;;  %s3113_s13 = sld [smem:[#allocation5_spill]] }
   0x4   :  { %s3116_s5 = sld [smem:[#allocation6_spill]] }
   0x8   :  { %v66_v0 = vld [vmem:[%s3112_s26] sm:$0xff]  ;;  %v67_v2 = vld [vmem:[%s3112_s26 + $0x8] sm:$0xff]  ;;  %v68_v6 = vld [vmem:[%s3112_s26 + $0x10] sm:$0xff] }
   0x9   :  { %v2036_v1 = vld [vmem:[%s3113_s13] ss:$0 sm:$0xff]  ;;  %v69_v7 = vld [vmem:[%s3112_s26 + $0x18] sm:$0xff]  ;;  %v71_v12 = vld [vmem:[%s3112_s26 + $0x28] sm:$0xff] }
   0xa   :  { %v85_v4 = vmul.f32 %v2036_v1, %v66_v0  ;;  %v86_v5 = vmul.f32 %v2036_v1, %v67_v2  ;;  %v87_v8 = vmul.f32 %v2036_v1, %v68_v6  ;;  %v88_v9 = vmul.f32 %v2036_v1, %v69_v7  ;;  %v70_v10 = vld [vmem:[%s3112_s26 + $0x20] sm:$0xff]  ;;  %v72_v18 = vld [vmem:[%s3112_s26 + $0x30] sm:$0xff]  ;;  %v73_v19 = vld [vmem:[%s3112_s26 + $0x38] sm:$0xff] }
   0xb   :  { %v89_v15 = vmul.f32 %v2036_v1, %v70_v10  ;;  %v90_v17 = vmul.f32 %v2036_v1, %v71_v12  ;;  %v91_v21 = vmul.f32 %v2036_v1, %v72_v18  ;;  %v92_v23 = vmul.f32 %v2036_v1, %v73_v19  ;;  %v74_v24 = vld [vmem:[%s3112_s26 + $0x40] sm:$0xff]  ;;  %v75_v25 = vld [vmem:[%s3112_s26 + $0x48] sm:$0xff]  ;;  %v76_v30 = vld [vmem:[%s3112_s26 + $0x50] sm:$0xff] }
   0xc   :  { %v98_v11 = vsel %vm97_vm0, %v85_v4, 0.0  ;;  %v104_v13 = vsel %vm97_vm0, %v87_v8, 0.0  ;;  %v101_v14 = vsel %vm97_vm0, %v86_v5, 0.0  ;;  %v107_v16 = vsel %vm97_vm0, %v88_v9, 0.0  ;;  %v77_v31 = vld [vmem:[%s3112_s26 + $0x58] sm:$0xff]  ;;  %v249_v12 = vld [vmem:[%s3092_s6] sm:$0xff] }
   0xd   :  { %99 = vadd.xlane.f32.xlu0 %v98_v11  ;;  %105 = vadd.xlane.f32.xlu1 %v104_v13  ;;  %v110_v20 = vsel %vm97_vm0, %v89_v15, 0.0  ;;  %v113_v22 = vsel %vm97_vm0, %v90_v17, 0.0  ;;  %v116_v26 = vsel %vm97_vm0, %v91_v21, 0.0  ;;  %v93_v27 = vmul.f32 %v2036_v1, %v74_v24  ;;  %v2037_v39 = vld [vmem:[#allocation3] ss:$0 sm:$0xff]  ;;  %v250_v13 = vld [vmem:[%s3092_s6 + $0x8] sm:$0xff] }
   0xe   :  { %v119_v28 = vsel %vm97_vm0, %v92_v23, 0.0  ;;  %v94_v29 = vmul.f32 %v2036_v1, %v75_v25  ;;  %v95_v33 = vmul.f32 %v2036_v1, %v76_v30  ;;  %v96_v35 = vmul.f32 %v2036_v1, %v77_v31  ;;  %v244_v15 = vld [vmem:[%s3094_s0] sm:$0xff]  ;;  %v251_v17 = vld [vmem:[%s3092_s6 + $0x10] sm:$0xff]  ;;  %v252_v18 = vld [vmem:[%s3092_s6 + $0x18] sm:$0xff] }
   0xf   :  { %v122_v32 = vsel %vm97_vm0, %v93_v27, 0.0  ;;  %2243 = vmatprep.mubr.msk.f32.mxu1 %vm391_vm1, %v244_v15  ;;  %v246_v19 = vld [vmem:[%s3094_s0 + $0x10] sm:$0xff]  ;;  %v253_v21 = vld [vmem:[%s3092_s6 + $0x20] sm:$0xff]  ;;  %v256_v24 = vld [vmem:[%s3092_s6 + $0x38] sm:$0xff] }
  0x10   :  { %v125_v34 = vsel %vm97_vm0, %v94_v29, 0.0  ;;  %v128_v36 = vsel %vm97_vm0, %v95_v33, 0.0  ;;  %v131_v38 = vsel %vm97_vm0, %v96_v35, 0.0  ;;  %v255_v23 = vld [vmem:[%s3092_s6 + $0x30] sm:$0xff]  ;;  %v257_v25 = vld [vmem:[%s3092_s6 + $0x40] sm:$0xff] }
  0x11   :  { %102 = vadd.xlane.f32.xlu0 %v101_v14  ;;  %108 = vadd.xlane.f32.xlu1 %v107_v16  ;;  %v248_v14 = vld [vmem:[%s3093_s1] sm:$0xff]  ;;  %v245_v16 = vld [vmem:[%s3094_s0 + $0x8] sm:$0xff]  ;;  %v259_v27 = vld [vmem:[%s3092_s6 + $0x50] sm:$0xff] }
  0x12   :  { %2241 = vmatprep.subr.mxu1 %v248_v14  ;;  %v2038_v30 = vld [vmem:[%s3095_s2] ss:$0 sm:$0xff]  ;;  %s2571_s2 = smov 16  }
  0x13   :  { %2242 = vmatpush3.msra.mxu1 %v248_v14 }
  0x14   :  { %2244 = vmatmul.mubr.msk.f32.vlgmr.msra.gmra.mrb[0].mxu1 %vm391_vm1, %v245_v16 }
  0x15   :  { %111 = vadd.xlane.f32.xlu0 %v110_v20  ;;  %114 = vadd.xlane.f32.xlu1 %v113_v22  ;;  %v247_v20 = vld [vmem:[%s3094_s0 + $0x18] sm:$0xff]  ;;  %v254_v22 = vld [vmem:[%s3092_s6 + $0x28] sm:$0xff] }
  0x16   :  { %2246 = vmatprep.mubr.msk.f32.mxu1 %vm391_vm1, %v246_v19 }
  0x18   :  { %2247 = vmatmul.mubr.msk.f32.gmra.mrb[2].mxu1 %vm391_vm1, %v247_v20 }
  0x19   :  { %117 = vadd.xlane.f32.xlu0 %v116_v26  ;;  %120 = vadd.xlane.f32.xlu1 %v119_v28  ;;  %v258_v26 = vld [vmem:[%s3092_s6 + $0x48] sm:$0xff]  ;;  %v260_v28 = vld [vmem:[%s3092_s6 + $0x58] sm:$0xff] }
  0x1d   :  { %123 = vadd.xlane.f32.xlu0 %v122_v32  ;;  %126 = vadd.xlane.f32.xlu1 %v125_v34 }
  0x21   :  { %129 = vadd.xlane.f32.xlu0 %v128_v36  ;;  %132 = vadd.xlane.f32.xlu1 %v131_v38 }
  0x9a   :  { %v100_v40 = vpop.xlane.xlu0 %99  ;;  %v106_v42 = vpop.xlane.xlu1 %105 }
  0x9b   :  { %v141_v41 = vadd.f32 %v2037_v39, %v100_v40  ;;  %v143_v46 = vadd.f32 %v2037_v39, %v106_v42 }
  0x9d   :  { %v153_v43 = vmax.f32 %v141_v41, 0.0  ;;  %v155_v49 = vmax.f32 %v143_v46, 0.0 }
  0x9e   :  { %v103_v44 = vpop.xlane.xlu0 %102  ;;  %v109_v47 = vpop.xlane.xlu1 %108 }
  0x9f   :  { %v142_v45 = vadd.f32 %v2037_v39, %v103_v44  ;;  %168 = vperm.xlu0 %2528, %v153_v43   ;;  %v144_v50 = vadd.f32 %v2037_v39, %v109_v47  ;;  %v2058_v44 = vld [vmem:[%s3096_s7 + $0x1] ss:$0 sm:$0xff] }
  0xa1   :  { %v154_v48 = vmax.f32 %v142_v45, 0.0  ;;  %v156_v53 = vmax.f32 %v144_v50, 0.0 }
  0xa2   :  { %v115_v51 = vpop.xlane.xlu1 %114  ;;  %v112_v52 = vpop.xlane.xlu0 %111 }
  0xa3   :  { %173 = vperm.xlu1 %2529, %v154_v48   ;;  %v145_v54 = vadd.f32 %v2037_v39, %v112_v52  ;;  %v146_v57 = vadd.f32 %v2037_v39, %v115_v51 }
  0xa5   :  { %v157_v56 = vmax.f32 %v145_v54, 0.0  ;;  %v158_v62 = vmax.f32 %v146_v57, 0.0 }
  0xa6   :  { %v121_v55 = vpop.xlane.xlu1 %120  ;;  %v118_v59 = vpop.xlane.xlu0 %117 }
  0xa7   :  { %178 = vperm.xlu1 %2529, %v155_v49   ;;  %v147_v63 = vadd.f32 %v2037_v39, %v118_v59  ;;  %v148_v5 = vadd.f32 %v2037_v39, %v121_v55 }
  0xa9   :  { %v159_v4 = vmax.f32 %v147_v63, 0.0  ;;  %v160_v6 = vmax.f32 %v148_v5, 0.0 }
  0xaa   :  { %v127_v58 = vpop.xlane.xlu1 %126  ;;  %v124_v2 = vpop.xlane.xlu0 %123 }
  0xab   :  { %183 = vperm.xlu1 %2529, %v156_v53   ;;  %v150_v60 = vadd.f32 %v2037_v39, %v127_v58  ;;  %v149_v7 = vadd.f32 %v2037_v39, %v124_v2 }
  0xad   :  { %v162_v61 = vmax.f32 %v150_v60, 0.0  ;;  %v161_v9 = vmax.f32 %v149_v7, 0.0  ;;  %v2047_v7 = vld [vmem:[%s3096_s7] ss:$0 sm:$0xff]  ;;  %s2575_s7 = smov 112  }
  0xae   :  { %v133_v0 = vpop.xlane.xlu1 %132  ;;  %v130_v8 = vpop.xlane.xlu0 %129 }
  0xaf   :  { %188 = vperm.xlu1 %2529, %v157_v56   ;;  %v152_v1 = vadd.f32 %v2037_v39, %v133_v0  ;;  %213 = vperm.xlu0 %2528, %v162_v61   ;;  %v151_v10 = vadd.f32 %v2037_v39, %v130_v8 }
  0xb1   :  { %v164_v3 = vmax.f32 %v152_v1, 0.0  ;;  %v163_v11 = vmax.f32 %v151_v10, 0.0 }
  0xb3   :  { %193 = vperm.xlu1 %2529, %v158_v62   ;;  %223 = vperm.xlu0 %2528, %v164_v3   ;;  %v2572_v3 = vmov 0.0|0.0  }
  0xb4   :  { %2422 = vmatprep.subr.bf16.mxu1 %v2572_v3 }
  0xb7   :  { %198 = vperm.xlu1 %2529, %v159_v4  }
  0xbb   :  { %203 = vperm.xlu1 %2529, %v160_v6   ;;  %v2574_v6 = vmov 0.0  }
  0xbc   :  { %2257 = vmatprep.mubr.msk.f32.mxu1 %vm2573_vm3, %v2574_v6 }
  0xbf   :  { %208 = vperm.xlu1 %2529, %v161_v9  }
  0xc3   :  { %218 = vperm.xlu1 %2529, %v163_v11  }
  0xe7   :  { %v2245_v1 = vpop.f32.mrb[0].mxu1 }
  0xe8   :  { %v470_v2 = vpop.f32.mrb[1].mxu1 }
  0xeb   :  { %v2248_v4 = vpop.f32.mrb[2].mxu1 }
  0xec   :  { %261 = vxpose.xlu1.b32.start [1/12] (short) (narrow) %v249_v12, 32  ;;  %v480_v5 = vpop.f32.mrb[3].mxu1 }
  0xf0   :  { %262 = vxpose.xlu1.b32.cont [2/12] (short) (narrow) %v250_v13, 32 }
  0xf4   :  { %263 = vxpose.xlu1.b32.cont [3/12] (short) (narrow) %v251_v17, 32 }
  0xf8   :  { %264 = vxpose.xlu1.b32.cont [4/12] (short) (narrow) %v252_v18, 32 }
  0xfc   :  { %265 = vxpose.xlu1.b32.cont [5/12] (short) (narrow) %v253_v21, 32 }
 0x100   :  { %266 = vxpose.xlu1.b32.cont [6/12] (short) (narrow) %v254_v22, 32 }
 0x104   :  { %267 = vxpose.xlu1.b32.cont [7/12] (short) (narrow) %v255_v23, 32 }
 0x108   :  { %268 = vxpose.xlu1.b32.cont [8/12] (short) (narrow) %v256_v24, 32 }
 0x10c   :  { %269 = vxpose.xlu1.b32.cont [9/12] (short) (narrow) %v257_v25, 32 }
 0x110   :  { %270 = vxpose.xlu1.b32.cont [10/12] (short) (narrow) %v258_v26, 32 }
 0x114   :  { %271 = vxpose.xlu1.b32.cont [11/12] (short) (narrow) %v259_v27, 32 }
 0x118   :  { %272 = vxpose.xlu1.b32.end [12/12] (short) (narrow) %v260_v28, 32 }
 0x11e   :  { %v169_v29 = vpop.permute.xlu0 %168 }
 0x11f   :  { %v232_v32 = vmul.f32 %v2038_v30, %v169_v29 }
 0x122   :  { %v174_v31 = vpop.permute.xlu1 %173 }
 0x123   :  { %v233_v33 = vmul.f32 %v2038_v30, %v174_v31 }
 0x125   :  { %v2398_v34 = vpack.c.bf16 %v233_v33, %v232_v32  ;;  %v490_v33 = vld [vmem:[%s3097_s8] sm:$0x1] }
 0x126   :  { %v179_v35 = vpop.permute.xlu1 %178 }
 0x127   :  { %2399 = vmatprep.subr.bf16.mxu0 %v2398_v34  ;;  %v234_v37 = vmul.f32 %v2038_v30, %v179_v35 }
 0x128   :  { %2401 = vmatpush3.bf16.msra.mxu0 %v2398_v34 }
 0x12a   :  { %v184_v36 = vpop.permute.xlu1 %183 }
 0x12b   :  { %v235_v38 = vmul.f32 %v2038_v30, %v184_v36 }
 0x12d   :  { %v2402_v39 = vpack.c.bf16 %v235_v38, %v234_v37 }
 0x12e   :  { %v189_v40 = vpop.permute.xlu1 %188  ;;  %v214_v47 = vpop.permute.xlu0 %213 }
 0x12f   :  { %2403 = vmatprep.subr.bf16.mxu0 %v2402_v39  ;;  %v236_v42 = vmul.f32 %v2038_v30, %v189_v40  ;;  %v241_v52 = vmul.f32 %v2038_v30, %v214_v47 }
 0x130   :  { %2405 = vmatpush3.bf16.msra.mxu0 %v2402_v39 }
 0x132   :  { %v194_v41 = vpop.permute.xlu1 %193  ;;  %v224_v54 = vpop.permute.xlu0 %223 }
 0x133   :  { %v237_v43 = vmul.f32 %v2038_v30, %v194_v41  ;;  %v243_v57 = vmul.f32 %v2038_v30, %v224_v54  ;;  %v2850_v54 = vld [vmem:[%s3098_s10] sm:$0xff] }
 0x134   :  { %vm62_vm8 = vcmp.gt.f32.partialorder %v2850_v54, 0.0 }
 0x135   :  { %v2406_v45 = vpack.c.bf16 %v237_v43, %v236_v42 }
 0x136   :  { %v199_v46 = vpop.permute.xlu1 %198  ;;  %820 = vrot.lane.b32.xlu1 %v2058_v44, %s2571_s2 }
 0x137   :  { %2407 = vmatprep.subr.bf16.mxu0 %v2406_v45  ;;  %v238_v49 = vmul.f32 %v2038_v30, %v199_v46  ;;  %v598_v46 = vlaneseq }
 0x138   :  { %2409 = vmatpush3.bf16.msra.mxu0 %v2406_v45 }
 0x139   :  { %v2831_v47 = vshrl.u32 %v598_v46, 7 }
 0x13a   :  { %v204_v48 = vpop.permute.xlu1 %203 }
 0x13b   :  { %v239_v50 = vmul.f32 %v2038_v30, %v204_v48  ;;  %v2834_v48 = vsub.s32 0, %v2831_v47 }
 0x13d   :  { %v2410_v51 = vpack.c.bf16 %v239_v50, %v238_v49  ;;  %v2839_v50 = vld [vmem:[%s3098_s10 + $0x8] sm:$0xff] }
 0x13e   :  { %v209_v53 = vpop.permute.xlu1 %208  ;;  %vm63_vm6 = vcmp.gt.f32.partialorder %v2839_v50, 0.0 }
 0x13f   :  { %v240_v55 = vmul.f32 %v2038_v30, %v209_v53  ;;  %2411 = vmatprep.subr.bf16.mxu0 %v2410_v51 }
 0x140   :  { %2413 = vmatpush3.bf16.msra.mxu0 %v2410_v51  ;;  %v2844_v51 = vld [vmem:[%s3098_s10 + $0x10] sm:$0xff] }
 0x141   :  { %v2414_v56 = vpack.c.bf16 %v241_v52, %v240_v55  ;;  %vm64_vm7 = vcmp.gt.f32.partialorder %v2844_v51, 0.0 }
 0x142   :  { %v219_v58 = vpop.permute.xlu1 %218 }
 0x143   :  { %v242_v59 = vmul.f32 %v2038_v30, %v219_v58  ;;  %2415 = vmatprep.subr.bf16.mxu0 %v2414_v56 }
 0x144   :  { %2417 = vmatpush3.bf16.msra.mxu0 %v2414_v56 }
 0x145   :  { %v2418_v60 = vpack.c.bf16 %v243_v57, %v242_v59  ;;  %v2855_v59 = vld [vmem:[%s3098_s10 + $0x18] sm:$0xff] }
 0x146   :  { %vm65_vm13 = vcmp.gt.f32.partialorder %v2855_v59, 0.0 }
 0x147   :  { %2419 = vmatprep.subr.bf16.mxu0 %v2418_v60 }
 0x148   :  { %2421 = vmatpush3.bf16.msra.mxu0 %v2418_v60 }
 0x16c   :  { %v277_v61 = vpop.trf.xlu1 }
 0x16d   :  { %2235 = vmatprep.mubr.msk.f32.mxu0 %vm293_vm2, %v277_v61 }
 0x170   :  { %v278_v62 = vpop.trf.xlu1 }
 0x171   :  { %2236 = vmatmul.mubr.msk.f32.vlgmr.msra.gmra.mrb[0].mxu0 %vm293_vm2, %v278_v62 }
 0x174   :  { %v279_v63 = vpop.trf.xlu1 }
 0x175   :  { %2238 = vmatprep.mubr.msk.f32.mxu0 %vm293_vm2, %v279_v63 }
 0x178   :  { %v280_v0 = vpop.trf.xlu1 }
 0x179   :  { %2239 = vmatmul.mubr.msk.f32.gmra.mrb[2].mxu0 %vm293_vm2, %v280_v0 }
 0x1a8   :  { %v2787_v9 = vpop.permute.xlu1 %820 }
 0x244   :  { %v2237_v8 = vpop.f32.mrb[0].mxu0 }
 0x245   :  { %v476_v10 = vadd.f32 %v2245_v1, %v2237_v8  ;;  %v372_v11 = vpop.f32.mrb[1].mxu0 }
 0x246   :  { %v2789_v12 = vadd.f32 %v470_v2, %v372_v11 }
 0x247   :  { %v824_v13 = vmul.f32 %v2787_v9, %v476_v10  ;;  %v497_v14 = vmul.f32 %v2047_v7, %v476_v10 }
 0x248   :  { %v2423_v16 = vpack.c.bf16 %v476_v10, %v2789_v12  ;;  %v496_v17 = vmul.f32 %v2047_v7, %v2789_v12  ;;  %v2530_v18 = vpack.i.bf16 %v476_v10, %v2789_v12 }
 0x249   :  { %833 = vrot.lane.b32.xlu1 %v824_v13, %s2575_s7  ;;  %v504_v19 = vsel %vm500_vm4, %v497_v14, 0.0 }
 0x24a   :  { %505 = vadd.xlane.f32.xlu0 %v504_v19  ;;  %2425 = vmatpush3.bf16.xpose.msk.msra.mxu1 %vm2794_vm5, %v2423_v16  ;;  %v501_v23 = vsel %vm500_vm4, %v496_v17, 0.0 }
 0x24b   :  { %2426 = vmatprep.subr.bf16.mxu1 %v2572_v3 }
 0x24c   :  { %v2240_v20 = vpop.f32.mrb[2].mxu0 }
 0x24d   :  { %v486_v21 = vadd.f32 %v2248_v4, %v2240_v20  ;;  %v382_v22 = vpop.f32.mrb[3].mxu0 }
 0x24e   :  { %v481_v24 = vadd.f32 %v480_v5, %v382_v22  ;;  %502 = vadd.xlane.f32.xlu0 %v501_v23 }
 0x24f   :  { %v499_v25 = vmul.f32 %v2047_v7, %v486_v21  ;;  %v826_v31 = vmul.f32 %v2787_v9, %v486_v21 }
 0x250   :  { %v2427_v26 = vpack.c.bf16 %v486_v21, %v481_v24  ;;  %v825_v27 = vmul.f32 %v2787_v9, %v481_v24  ;;  %v498_v28 = vmul.f32 %v2047_v7, %v481_v24  ;;  %v2535_v29 = vpack.i.bf16 %v486_v21, %v481_v24 }
 0x251   :  { %v510_v32 = vsel %vm500_vm4, %v499_v25, 0.0 }
 0x252   :  { %835 = vrot.lane.b32.xlu1 %v825_v27, %s2575_s7  ;;  %2429 = vmatpush3.bf16.xpose.msk.msra.mxu1 %vm2794_vm5, %v2427_v26  ;;  %v507_v30 = vsel %vm500_vm4, %v498_v28, 0.0 }
 0x253   :  { %2431 = vmatprep.subr.bf16.mxu1 %v2423_v16  ;;  %508 = vadd.xlane.f32.xlu0 %v507_v30 }
 0x256   :  { %837 = vrot.lane.b32.xlu1 %v826_v31, %s2575_s7 }
 0x257   :  { %511 = vadd.xlane.f32.xlu0 %v510_v32 }
 0x259   :  { %2258 = vmatmul.mubr.msk.f32.vlgmr.msra.gmra.mrb[4].mxu1 %vm500_vm4, %v490_v33 }
 0x25a   :  { %2433 = vmatpush3.bf16.msra.mxu1 %v2423_v16 }
 0x25b   :  { %2435 = vmatprep.subr.bf16.mxu1 %v2427_v26 }
 0x25e   :  { %2437 = vmatpush3.bf16.msra.mxu1 %v2427_v26 }
 0x25f   :  { %2438 = vmatprep.subr.bf16.mxu1 %v2572_v3 }
 0x26d   :  { %2531 = vrot.lane.b32.xlu0 %v2530_v18, %s2575_s7 }
 0x271   :  { %2536 = vrot.lane.b32.xlu0 %v2535_v29, %s2575_s7 }
 0x2d7   :  { %v506_v34 = vpop.xlane.xlu0 %505 }
 0x2db   :  { %v503_v35 = vpop.xlane.xlu0 %502 }
 0x2e0   :  { %v509_v36 = vpop.xlane.xlu0 %508 }
 0x2e4   :  { %v512_v37 = vpop.xlane.xlu0 %511 }
 0x2e8   :  { %v2532_v38 = vpop.permute.xlu0 %2531 }
 0x2e9   :  { %v2534_v39 = vunpack.i.h.bf16 %v2532_v38  ;;  %v2533_v40 = vunpack.i.l.bf16 %v2532_v38 }
 0x2eb   :  { %v2822_v41 = vpack.c.bf16 %v2534_v39, %v2533_v40 }
 0x2ec   :  { %v2537_v42 = vpop.permute.xlu0 %2536 }
 0x2ed   :  { %v2539_v43 = vunpack.i.h.bf16 %v2537_v42  ;;  %v2538_v44 = vunpack.i.l.bf16 %v2537_v42  ;;  %2447 = vmatprep.subr.bf16.mxu0 %v2822_v41 }
 0x2ee   :  { %2449 = vmatpush3.bf16.msra.mxu0 %v2822_v41 }
 0x2ef   :  { %v2826_v45 = vpack.c.bf16 %v2539_v43, %v2538_v44 }
 0x2f1   :  { %2451 = vmatprep.subr.bf16.mxu0 %v2826_v45 }
 0x2f2   :  { %2453 = vmatpush3.bf16.msra.mxu0 %v2826_v45 }
 0x32c   :  { %v594_v49 = vpop.f32.mrb[4].mxu1 }
 0x32d   :  { %v601_v52 = vrot.slane %v594_v49, %v2834_v48  ;;  %v2259_v53 = vpop.f32.mrb[5].mxu1 }
 0x32f   :  { %v602_v55 = vadd.f32 %v601_v52, %v503_v35  ;;  %v603_v56 = vadd.f32 %v601_v52, %v506_v34  ;;  %v604_v57 = vadd.f32 %v601_v52, %v509_v36  ;;  %v605_v58 = vadd.f32 %v601_v52, %v512_v37 }
 0x331   :  { %vm606_vm9 = vcmp.gt.f32.partialorder %v602_v55, 0.0  ;;  %vm607_vm10 = vcmp.gt.f32.partialorder %v603_v56, 0.0  ;;  %vm608_vm11 = vcmp.gt.f32.partialorder %v604_v57, 0.0  ;;  %vm609_vm12 = vcmp.gt.f32.partialorder %v605_v58, 0.0 }
 0x332   :  { %v610_v60 = vmul.f32 0.2, %v602_v55  ;;  %v611_v61 = vmul.f32 0.2, %v603_v56  ;;  %v612_v62 = vmul.f32 0.2, %v604_v57 }
 0x333   :  { %v613_v63 = vmul.f32 0.2, %v605_v58 }
 0x334   :  { %v614_v0 = vsel %vm606_vm9, %v602_v55, %v610_v60  ;;  %v615_v1 = vsel %vm607_vm10, %v603_v56, %v611_v61  ;;  %v616_v2 = vsel %vm608_vm11, %v604_v57, %v612_v62  ;;  %vm1208_vm9 = vcmask 523264  }
 0x335   :  { %v617_v4 = vsel %vm609_vm12, %v605_v58, %v613_v63  ;;  %v619_v5 = vsel %vm63_vm6, %v615_v1, -1e+30  ;;  %v620_v7 = vsel %vm64_vm7, %v616_v2, -1e+30  ;;  %v618_v8 = vsel %vm62_vm8, %v614_v0, -1e+30 }
 0x336   :  { %v621_v10 = vsel %vm65_vm13, %v617_v4, -1e+30  ;;  %v624_v11 = vsel %vm622_vm14, %v619_v5, -inf  ;;  %v625_v13 = vsel %vm622_vm14, %v620_v7, -inf  ;;  %v623_v14 = vsel %vm622_vm14, %v618_v8, -inf }
 0x337   :  { %v626_v16 = vsel %vm622_vm14, %v621_v10, -inf  ;;  %v627_v17 = vmax.f32 %v623_v14, %v624_v11 }
 0x338   :  { %v628_v18 = vmax.f32 %v625_v13, %v626_v16 }
 0x33a   :  { %v629_v19 = vmax.f32 %v627_v17, %v628_v18 }
 0x33c   :  { %v630_v20 = vrot.slane %v629_v19, 4 }
 0x33e   :  { %v631_v21 = vmax.f32 %v629_v19, %v630_v20 }
 0x340   :  { %v632_v22 = vrot.slane %v631_v21, 2 }
 0x342   :  { %v633_v23 = vmax.f32 %v631_v21, %v632_v22 }
 0x344   :  { %v634_v24 = vrot.slane %v633_v23, 1 }
 0x346   :  { %v635_v25 = vmax.f32 %v633_v23, %v634_v24 }
 0x348   :  { %v636_v26 = vsub.f32 %v618_v8, %v635_v25  ;;  %v637_v27 = vsub.f32 %v619_v5, %v635_v25  ;;  %v638_v28 = vsub.f32 %v620_v7, %v635_v25  ;;  %v639_v29 = vsub.f32 %v621_v10, %v635_v25  ;;  %v834_v10 = vpop.permute.xlu1 %833 }
 0x349   :  { %v823_v8 = vmul.f32 %v2787_v9, %v2789_v12  ;;  %v846_v11 = vsel %vm500_vm4, %v834_v10, 0.0  ;;  %v813_v12 = vld [vmem:[%s3097_s8 + $0x1] sm:$0x1] }
 0x34a   :  { %v640_v30 = vmul.f32 1.442695, %v636_v26  ;;  %v642_v31 = vmul.f32 1.442695, %v637_v27  ;;  %v644_v32 = vmul.f32 1.442695, %v638_v28 }
 0x34b   :  { %v646_v33 = vmul.f32 1.442695, %v639_v29 }
 0x34c   :  { %2540 = vpow2.f32 %v640_v30 }
 0x34d   :  { %2542 = vpow2.f32 %v642_v31 }
 0x34e   :  { %2544 = vpow2.f32 %v644_v32 }
 0x34f   :  { %2546 = vpow2.f32 %v646_v33 }
 0x356   :  { %v2541_v34 = vpop.eup %2540 }
 0x357   :  { %v2543_v35 = vpop.eup %2542  ;;  %v648_v36 = vmul.f32 %v2541_v34, %v2850_v54 }
 0x358   :  { %v2545_v37 = vpop.eup %2544  ;;  %v649_v38 = vmul.f32 %v2543_v35, %v2839_v50 }
 0x359   :  { %v2547_v39 = vpop.eup %2546  ;;  %v650_v40 = vmul.f32 %v2545_v37, %v2844_v51  ;;  %v652_v42 = vsel %vm622_vm14, %v648_v36, 0.0 }
 0x35a   :  { %v651_v43 = vmul.f32 %v2547_v39, %v2855_v59  ;;  %v653_v44 = vsel %vm622_vm14, %v649_v38, 0.0 }
 0x35b   :  { %v654_v49 = vadd.f32 %v653_v44, %v652_v42  ;;  %v655_v52 = vsel %vm622_vm14, %v650_v40, 0.0 }
 0x35c   :  { %v657_v55 = vsel %vm622_vm14, %v651_v43, 0.0 }
 0x35d   :  { %v656_v53 = vadd.f32 %v655_v52, %v654_v49 }
 0x35f   :  { %v658_v56 = vadd.f32 %v657_v55, %v656_v53 }
 0x361   :  { %v659_v57 = vrot.slane %v658_v56, 4 }
 0x363   :  { %v660_v58 = vadd.f32 %v659_v57, %v658_v56 }
 0x365   :  { %v661_v60 = vrot.slane %v660_v58, 2 }
 0x367   :  { %v662_v61 = vadd.f32 %v661_v60, %v660_v58 }
 0x369   :  { %v663_v62 = vrot.slane %v662_v61, 1 }
 0x36b   :  { %v664_v63 = vadd.f32 %v663_v62, %v662_v61 }
 0x36d   :  { %v665_v0 = vmax.f32 %v664_v63, 1e-30 }
 0x36f   :  { %2548 = vrcp.f32 %v665_v0 }
 0x379   :  { %v2549_v1 = vpop.eup %2548 }
 0x37a   :  { %v667_v2 = vmul.f32 %v2549_v1, %v648_v36  ;;  %v668_v4 = vmul.f32 %v2549_v1, %v649_v38  ;;  %v669_v5 = vmul.f32 %v2549_v1, %v650_v40  ;;  %v670_v7 = vmul.f32 %v2549_v1, %v651_v43 }
 0x37c   :  { %675 = vxpose.xlu0.b32.start [1/4] (short) (narrow) %v667_v2, 32 }
 0x380   :  { %676 = vxpose.xlu0.b32.cont [2/4] (short) (narrow) %v668_v4, 32 }
 0x384   :  { %677 = vxpose.xlu0.b32.cont [3/4] (short) (narrow) %v669_v5, 32 }
 0x388   :  { %678 = vxpose.xlu0.b32.end [4/4] (short) (narrow) %v670_v7, 32 }
 0x3b1   :  { %831 = vrot.lane.b32.xlu0 %v823_v8, %s2575_s7 }
 0x3d0   :  { %847 = vadd.xlane.f32.xlu0 %v846_v11 }
 0x3fc   :  { %v691_v13 = vpop.trf.xlu0 }
 0x3fd   :  { %2268 = vmatprep.mubr.msk.f32.mxu1 %vm622_vm14, %v691_v13 }
 0x400   :  { %v692_v14 = vpop.trf.xlu0 }
 0x401   :  { %2269 = vmatmul.mubr.msk.f32.vlgmr.msra.gmra.mrb[6].mxu1 %vm622_vm14, %v692_v14 }
 0x402   :  { %2441 = vmatpush3.bf16.xpose.msk.msra.mxu1 %vm2794_vm5, %v2822_v41  ;;  %v836_v41 = vpop.permute.xlu1 %835 }
 0x403   :  { %2442 = vmatprep.subr.bf16.mxu1 %v2572_v3  ;;  %v849_v19 = vsel %vm500_vm4, %v836_v41, 0.0 }
 0x404   :  { %v693_v16 = vpop.trf.xlu0 }
 0x405   :  { %2271 = vmatprep.mubr.msk.f32.mxu1 %vm622_vm14, %v693_v16 }
 0x406   :  { %v838_v20 = vpop.permute.xlu1 %837 }
 0x407   :  { %v852_v15 = vsel %vm500_vm4, %v838_v20, 0.0 }
 0x408   :  { %v694_v9 = vpop.trf.xlu0 }
 0x409   :  { %2272 = vmatmul.mubr.msk.f32.gmra.mrb[8].mxu1 %vm622_vm14, %v694_v9 }
 0x40a   :  { %2445 = vmatpush3.bf16.xpose.msk.msra.mxu1 %vm2794_vm5, %v2826_v45  ;;  %2282 = vmatprep.mubr.msk.f32.mxu1 %vm2573_vm3, %v2574_v6  ;;  %v2053_v45 = vld [vmem:[%s3099_s9] ss:$0 sm:$0xff] }
 0x411   :  { %2283 = vmatmul.mubr.msk.f32.vlgmr.msra.gmra.mrb[10].mxu1 %vm500_vm4, %v813_v12 }
 0x423   :  { %v832_v17 = vpop.permute.xlu0 %831 }
 0x424   :  { %v843_v18 = vsel %vm500_vm4, %v832_v17, 0.0 }
 0x425   :  { %844 = vadd.xlane.f32.xlu1 %v843_v18 }
 0x429   :  { %850 = vadd.xlane.f32.xlu1 %v849_v19 }
 0x42d   :  { %853 = vadd.xlane.f32.xlu1 %v852_v15 }
 0x45d   :  { %v848_v42 = vpop.xlane.xlu0 %847 }
 0x4b2   :  { %v845_v27 = vpop.xlane.xlu1 %844 }
 0x4b6   :  { %v851_v33 = vpop.xlane.xlu1 %850 }
 0x4ba   :  { %v854_v43 = vpop.xlane.xlu1 %853 }
 0x4d4   :  { %v2270_v21 = vpop.f32.mrb[6].mxu1 }
 0x4d5   :  { %v791_v22 = vadd.f32 %v2270_v21, %v2053_v45  ;;  %v785_v23 = vpop.f32.mrb[7].mxu1 }
 0x4d6   :  { %v786_v24 = vadd.f32 %v2053_v45, %v785_v23 }
 0x4d7   :  { %v805_v25 = vmax.f32 %v791_v22, 0.0 }
 0x4d8   :  { %v804_v26 = vmax.f32 %v786_v24, 0.0 }
 0x4d9   :  { %809 = vst.msk [vmem:[#allocation2 + $0x8] sm:$0xff] %vm500_vm4, %v805_v25 }
 0x4da   :  { %808 = vst.msk [vmem:[#allocation2] sm:$0xff] %vm500_vm4, %v804_v26 }
 0x4dc   :  { %v2273_v28 = vpop.f32.mrb[8].mxu1 }
 0x4dd   :  { %v801_v29 = vadd.f32 %v2273_v28, %v2053_v45  ;;  %v795_v30 = vpop.f32.mrb[9].mxu1 }
 0x4de   :  { %v796_v31 = vadd.f32 %v2053_v45, %v795_v30 }
 0x4df   :  { %v807_v32 = vmax.f32 %v801_v29, 0.0 }
 0x4e0   :  { %v806_v34 = vmax.f32 %v796_v31, 0.0  ;;  %v1201_v35 = vld [vmem:[#allocation2 + $0x8] sm:$0xff] }
 0x4e1   :  { %811 = vst.msk [vmem:[#allocation2 + $0x18] sm:$0xff] %vm500_vm4, %v807_v32  ;;  %v1200_v36 = vld [vmem:[#allocation2] sm:$0xff] }
 0x4e2   :  { %810 = vst.msk [vmem:[#allocation2 + $0x10] sm:$0xff] %vm500_vm4, %v806_v34  ;;  %v2912_v37 = vpack.c.bf16 %v1201_v35, %v1200_v36 }
 0x4e4   :  { %v940_v38 = vpop.f32.mrb[10].mxu1  ;;  %2455 = vmatprep.subr.bf16.mxu0 %v2912_v37  ;;  %2471 = vmatprep.subr.bf16.mxu1 %v2912_v37 }
 0x4e5   :  { %v947_v39 = vrot.slane %v940_v38, %v2834_v48  ;;  %v2284_v40 = vpop.f32.mrb[11].mxu1  ;;  %2473 = vmatpush3.bf16.msra.mxu1 %v2912_v37 }
 0x4e7   :  { %v948_v44 = vadd.f32 %v947_v39, %v845_v27  ;;  %v949_v49 = vadd.f32 %v947_v39, %v848_v42  ;;  %v950_v52 = vadd.f32 %v947_v39, %v851_v33  ;;  %v951_v53 = vadd.f32 %v947_v39, %v854_v43 }
 0x4e8   :  { %v1203_v55 = vld [vmem:[#allocation2 + $0x18] sm:$0xff] }
 0x4e9   :  { %vm952_vm15 = vcmp.gt.f32.partialorder %v948_v44, 0.0  ;;  %vm953_vm0 = vcmp.gt.f32.partialorder %v949_v49, 0.0  ;;  %vm954_vm2 = vcmp.gt.f32.partialorder %v950_v52, 0.0  ;;  %vm955_vm5 = vcmp.gt.f32.partialorder %v951_v53, 0.0  ;;  %v1202_v56 = vld [vmem:[#allocation2 + $0x10] sm:$0xff] }
 0x4ea   :  { %v956_v57 = vmul.f32 0.2, %v948_v44  ;;  %v957_v58 = vmul.f32 0.2, %v949_v49  ;;  %v958_v60 = vmul.f32 0.2, %v950_v52  ;;  %v2918_v61 = vpack.c.bf16 %v1203_v55, %v1202_v56 }
 0x4eb   :  { %v959_v62 = vmul.f32 0.2, %v951_v53 }
 0x4ec   :  { %v960_v63 = vsel %vm952_vm15, %v948_v44, %v956_v57  ;;  %v961_v0 = vsel %vm953_vm0, %v949_v49, %v957_v58  ;;  %v962_v1 = vsel %vm954_vm2, %v950_v52, %v958_v60  ;;  %2475 = vmatprep.subr.bf16.mxu1 %v2918_v61 }
 0x4ed   :  { %v963_v2 = vsel %vm955_vm5, %v951_v53, %v959_v62  ;;  %v964_v4 = vsel %vm62_vm8, %v960_v63, -1e+30  ;;  %v965_v5 = vsel %vm63_vm6, %v961_v0, -1e+30  ;;  %v966_v7 = vsel %vm64_vm7, %v962_v1, -1e+30  ;;  %2477 = vmatpush3.bf16.msra.mxu1 %v2918_v61 }
 0x4ee   :  { %v967_v8 = vsel %vm65_vm13, %v963_v2, -1e+30  ;;  %v968_v10 = vsel %vm622_vm14, %v964_v4, -inf  ;;  %v969_v11 = vsel %vm622_vm14, %v965_v5, -inf  ;;  %v970_v13 = vsel %vm622_vm14, %v966_v7, -inf }
 0x4ef   :  { %v971_v14 = vsel %vm622_vm14, %v967_v8, -inf  ;;  %v972_v16 = vmax.f32 %v968_v10, %v969_v11  ;;  %v1168_v10 = vmul.u32 2, %v2831_v47 }
 0x4f0   :  { %v973_v9 = vmax.f32 %v970_v13, %v971_v14 }
 0x4f1   :  { %v1184_v11 = vadd.s32 1, %v1168_v10 }
 0x4f2   :  { %v974_v12 = vmax.f32 %v972_v16, %v973_v9 }
 0x4f4   :  { %v975_v41 = vrot.slane %v974_v12, 4 }
 0x4f6   :  { %v976_v17 = vmax.f32 %v974_v12, %v975_v41 }
 0x4f8   :  { %v977_v18 = vrot.slane %v976_v17, 2 }
 0x4fa   :  { %v978_v19 = vmax.f32 %v976_v17, %v977_v18 }
 0x4fc   :  { %v979_v20 = vrot.slane %v978_v19, 1 }
 0x4fe   :  { %v980_v15 = vmax.f32 %v978_v19, %v979_v20  ;;  %v1163_v20 = vadd.s32 8, %v2831_v47 }
 0x500   :  { %v981_v45 = vsub.f32 %v964_v4, %v980_v15  ;;  %v982_v21 = vsub.f32 %v965_v5, %v980_v15  ;;  %v983_v22 = vsub.f32 %v966_v7, %v980_v15  ;;  %v984_v23 = vsub.f32 %v967_v8, %v980_v15 }
 0x501   :  { %v2950_v8 = vand.u32 127, %v598_v46  ;;  %v2064_v46 = vld [vmem:[%s3099_s9 + $0x1] ss:$0 sm:$0xff] }
 0x502   :  { %v985_v24 = vmul.f32 1.442695, %v981_v45  ;;  %v987_v25 = vmul.f32 1.442695, %v982_v21  ;;  %v989_v26 = vmul.f32 1.442695, %v983_v22 }
 0x503   :  { %v991_v27 = vmul.f32 1.442695, %v984_v23  ;;  %vm1188_vm10 = vcmp.eq.s32.totalorder %v2950_v8, %v1184_v11  ;;  %vm1172_vm11 = vcmp.eq.s32.totalorder %v2950_v8, %v1168_v10  ;;  %v1164_v21 = vadd.s32 16, %v2831_v47 }
 0x504   :  { %2550 = vpow2.f32 %v985_v24 }
 0x505   :  { %2552 = vpow2.f32 %v987_v25  ;;  %v1169_v25 = vmul.u32 2, %v1163_v20 }
 0x506   :  { %2554 = vpow2.f32 %v989_v26 }
 0x507   :  { %2556 = vpow2.f32 %v991_v27  ;;  %v1165_v27 = vadd.s32 24, %v2831_v47  ;;  %vm1173_vm15 = vcmp.eq.s32.totalorder %v2950_v8, %v1169_v25 }
 0x50e   :  { %v2551_v28 = vpop.eup %2550 }
 0x50f   :  { %v2553_v29 = vpop.eup %2552  ;;  %v993_v30 = vmul.f32 %v2551_v28, %v2850_v54  ;;  %v1170_v28 = vmul.u32 2, %v1164_v21 }
 0x510   :  { %v2555_v31 = vpop.eup %2554  ;;  %v994_v32 = vmul.f32 %v2553_v29, %v2839_v50  ;;  %v1185_v29 = vadd.s32 1, %v1169_v25 }
 0x511   :  { %v2557_v33 = vpop.eup %2556  ;;  %v995_v34 = vmul.f32 %v2555_v31, %v2844_v51  ;;  %v997_v35 = vsel %vm622_vm14, %v993_v30, 0.0  ;;  %v1186_v31 = vadd.s32 1, %v1170_v28  ;;  %vm1174_vm2 = vcmp.eq.s32.totalorder %v2950_v8, %v1170_v28 }
 0x512   :  { %v996_v36 = vmul.f32 %v2557_v33, %v2855_v59  ;;  %v998_v38 = vsel %vm622_vm14, %v994_v32, 0.0  ;;  %v1406_v33 = vld [vmem:[%s3100_s11 + $0x18] sm:$0xff]  ;;  %vm1189_vm12 = vcmp.eq.s32.totalorder %v2950_v8, %v1185_v29 }
 0x513   :  { %v999_v39 = vadd.f32 %v998_v38, %v997_v35  ;;  %v1000_v40 = vsel %vm622_vm14, %v995_v34, 0.0  ;;  %vm1190_vm0 = vcmp.eq.s32.totalorder %v2950_v8, %v1186_v31 }
 0x514   :  { %v1002_v43 = vsel %vm622_vm14, %v996_v36, 0.0 }
 0x515   :  { %v1001_v42 = vadd.f32 %v1000_v40, %v999_v39  ;;  %v2074_v39 = vsel %vm1189_vm12, 1.0, %v2574_v6  ;;  %v2070_v40 = vsel %vm1173_vm15, 1.0, %v2574_v6 }
 0x517   :  { %v1003_v44 = vadd.f32 %v1002_v43, %v1001_v42  ;;  %v2075_v42 = vsel %vm1190_vm0, 1.0, %v2574_v6  ;;  %v2071_v43 = vsel %vm1174_vm2, 1.0, %v2574_v6 }
 0x519   :  { %v1004_v49 = vrot.slane %v1003_v44, 4 }
 0x51b   :  { %v1005_v52 = vadd.f32 %v1004_v49, %v1003_v44 }
 0x51d   :  { %v1006_v53 = vrot.slane %v1005_v52, 2 }
 0x51f   :  { %v1007_v55 = vadd.f32 %v1006_v53, %v1005_v52  ;;  %v1403_v52 = vld [vmem:[%s3100_s11] sm:$0xff]  ;;  %v1404_v53 = vld [vmem:[%s3100_s11 + $0x8] sm:$0xff] }
 0x521   :  { %v1008_v56 = vrot.slane %v1007_v55, 1 }
 0x523   :  { %v1009_v57 = vadd.f32 %v1008_v56, %v1007_v55  ;;  %v2490_v55 = vpack.c.bf16 %v1404_v53, %v1403_v52  ;;  %v1612_v56 = vld [vmem:[%s3116_s5] sm:$0xff] }
 0x525   :  { %v1010_v58 = vmax.f32 %v1009_v57, 1e-30  ;;  %v1613_v57 = vld [vmem:[%s3116_s5 + $0x8] sm:$0xff] }
 0x527   :  { %2558 = vrcp.f32 %v1010_v58  ;;  %v2494_v58 = vpack.c.bf16 %v1613_v57, %v1612_v56 }
 0x531   :  { %v2559_v60 = vpop.eup %2558 }
 0x532   :  { %v1012_v62 = vmul.f32 %v2559_v60, %v993_v30  ;;  %v1013_v63 = vmul.f32 %v2559_v60, %v994_v32  ;;  %v1014_v0 = vmul.f32 %v2559_v60, %v995_v34  ;;  %v1015_v1 = vmul.f32 %v2559_v60, %v996_v36  ;;  %v1405_v32 = vld [vmem:[%s3100_s11 + $0x10] sm:$0xff] }
 0x533   :  { %v1171_v30 = vmul.u32 2, %v1165_v27  ;;  %v2486_v38 = vpack.c.bf16 %v1406_v33, %v1405_v32 }
 0x534   :  { %1020 = vxpose.xlu1.b32.start [1/4] (short) (narrow) %v1012_v62, 32 }
 0x535   :  { %v1187_v36 = vadd.s32 1, %v1171_v30 }
 0x537   :  { %vm1191_vm5 = vcmp.eq.s32.totalorder %v2950_v8, %v1187_v36 }
 0x538   :  { %1021 = vxpose.xlu1.b32.cont [2/4] (short) (narrow) %v1013_v63, 32  ;;  %v2076_v44 = vsel %vm1191_vm5, 1.0, %v2574_v6 }
 0x53c   :  { %1022 = vxpose.xlu1.b32.cont [3/4] (short) (narrow) %v1014_v0, 32 }
 0x540   :  { %1023 = vxpose.xlu1.b32.end [4/4] (short) (narrow) %v1015_v1, 32 }
 0x5b4   :  { %v1036_v2 = vpop.trf.xlu1 }
 0x5b5   :  { %2293 = vmatprep.mubr.msk.f32.mxu0 %vm622_vm14, %v1036_v2 }
 0x5b8   :  { %v1037_v4 = vpop.trf.xlu1 }
 0x5b9   :  { %2294 = vmatmul.mubr.msk.f32.vlgmr.msra.gmra.mrb[4].mxu0 %vm622_vm14, %v1037_v4 }
 0x5ba   :  { %2457 = vmatpush3.bf16.msra.mxu0 %v2912_v37  ;;  %v2073_v37 = vsel %vm1188_vm10, 1.0, %v2574_v6  ;;  %vm1175_vm10 = vcmp.eq.s32.totalorder %v2950_v8, %v1171_v30 }
 0x5bb   :  { %2459 = vmatprep.subr.bf16.mxu0 %v2918_v61  ;;  %2337 = vmatprep.mubr.msk.f32.mxu1 %vm1208_vm9, %v2073_v37  ;;  %v2072_v49 = vsel %vm1175_vm10, 1.0, %v2574_v6 }
 0x5bc   :  { %v1038_v5 = vpop.trf.xlu1 }
 0x5bd   :  { %2296 = vmatprep.mubr.msk.f32.mxu0 %vm622_vm14, %v1038_v5 }
 0x5be   :  { %2461 = vmatpush3.bf16.msra.mxu0 %v2918_v61  ;;  %v2069_v61 = vsel %vm1172_vm11, 1.0, %v2574_v6 }
 0x5c0   :  { %v1039_v7 = vpop.trf.xlu1 }
 0x5c1   :  { %2297 = vmatmul.mubr.msk.f32.gmra.mrb[6].mxu0 %vm622_vm14, %v1039_v7  ;;  %v2093_v7 = vld [vmem:[%s3102_s12] ss:$0 sm:$0xff] }
 0x5c2   :  { %2315 = vmatprep.mubr.msk.f32.mxu0 %vm1208_vm9, %v2069_v61 }
 0x68c   :  { %v2295_v13 = vpop.f32.mrb[4].mxu0 }
 0x68d   :  { %v1140_v14 = vadd.f32 %v2295_v13, %v2064_v46  ;;  %v1134_v16 = vpop.f32.mrb[5].mxu0 }
 0x68e   :  { %v1135_v9 = vadd.f32 %v2064_v46, %v1134_v16  ;;  %v2098_v16 = vld [vmem:[%s3103_s14] ss:$0 sm:$0xff] }
 0x68f   :  { %v1154_v12 = vmax.f32 %v1140_v14, 0.0 }
 0x690   :  { %v1153_v41 = vmax.f32 %v1135_v9, 0.0 }
 0x691   :  { %1158 = vst.msk [vmem:[#allocation2 + $0x28] sm:$0xff] %vm500_vm4, %v1154_v12 }
 0x692   :  { %1157 = vst.msk [vmem:[#allocation2 + $0x20] sm:$0xff] %vm500_vm4, %v1153_v41 }
 0x694   :  { %v2298_v17 = vpop.f32.mrb[6].mxu0 }
 0x695   :  { %v1150_v18 = vadd.f32 %v2298_v17, %v2064_v46  ;;  %v1144_v19 = vpop.f32.mrb[7].mxu0 }
 0x696   :  { %v1145_v15 = vadd.f32 %v2064_v46, %v1144_v19 }
 0x697   :  { %v1156_v45 = vmax.f32 %v1150_v18, 0.0 }
 0x698   :  { %v1155_v22 = vmax.f32 %v1145_v15, 0.0  ;;  %v1205_v23 = vld [vmem:[#allocation2 + $0x28] sm:$0xff] }
 0x699   :  { %1160 = vst.msk [vmem:[#allocation2 + $0x38] sm:$0xff] %vm500_vm4, %v1156_v45  ;;  %v1204_v24 = vld [vmem:[#allocation2 + $0x20] sm:$0xff] }
 0x69a   :  { %1159 = vst.msk [vmem:[#allocation2 + $0x30] sm:$0xff] %vm500_vm4, %v1155_v22  ;;  %v2462_v26 = vpack.c.bf16 %v1205_v23, %v1204_v24 }
 0x69c   :  { %2463 = vmatprep.subr.bf16.mxu0 %v2462_v26  ;;  %2479 = vmatprep.subr.bf16.mxu1 %v2462_v26 }
 0x69d   :  { %2465 = vmatpush3.bf16.msra.mxu0 %v2462_v26  ;;  %2481 = vmatpush3.bf16.msra.mxu1 %v2462_v26 }
 0x6a0   :  { %v1207_v34 = vld [vmem:[#allocation2 + $0x38] sm:$0xff] }
 0x6a1   :  { %v1206_v35 = vld [vmem:[#allocation2 + $0x30] sm:$0xff] }
 0x6a2   :  { %v2466_v47 = vpack.c.bf16 %v1207_v34, %v1206_v35 }
 0x6a4   :  { %2467 = vmatprep.subr.bf16.mxu0 %v2466_v47  ;;  %2483 = vmatprep.subr.bf16.mxu1 %v2466_v47 }
 0x6a5   :  { %2469 = vmatpush3.bf16.msra.mxu0 %v2466_v47  ;;  %2485 = vmatpush3.bf16.msra.mxu1 %v2466_v47 }
 0x6a6   :  { %2487 = vmatprep.subr.bf16.mxu0 %v2486_v38  ;;  %2495 = vmatprep.subr.bf16.mxu1 %v2494_v58 }
 0x6a8   :  { %2338 = vmatmul.mubr.msk.f32.vlgmr.msra.gmra.mrb[12].mxu1 %vm1208_vm9, %v2074_v39  ;;  %2316 = vmatmul.mubr.msk.f32.vlgmr.msra.gmra.mrb[8].mxu0 %vm1208_vm9, %v2070_v40 }
 0x6a9   :  { %2340 = vmatprep.mubr.msk.f32.mxu1 %vm1208_vm9, %v2075_v42  ;;  %2318 = vmatprep.mubr.msk.f32.mxu0 %vm1208_vm9, %v2071_v43 }
 0x6aa   :  { %2489 = vmatpush3.bf16.msra.mxu0 %v2486_v38  ;;  %2497 = vmatpush3.bf16.msra.mxu1 %v2494_v58 }
 0x6ab   :  { %2491 = vmatprep.subr.bf16.mxu0 %v2490_v55  ;;  %2498 = vmatprep.subr.bf16.mxu1 %v2572_v3 }
 0x6ac   :  { %2341 = vmatmul.mubr.msk.f32.gmra.mrb[14].mxu1 %vm1208_vm9, %v2076_v44  ;;  %2319 = vmatmul.mubr.msk.f32.gmra.mrb[10].mxu0 %vm1208_vm9, %v2072_v49  ;;  %vm3028_vm9 = vmpackc.low %vm391_vm1, %vm391_vm1 }
 0x77b   :  { %v2339_v60 = vpop.f32.mrb[12].mxu1  ;;  %v2317_v62 = vpop.f32.mrb[8].mxu0 }
 0x77c   :  { %v1384_v63 = vpop.f32.mrb[13].mxu1  ;;  %v1287_v0 = vpop.f32.mrb[9].mxu0 }
 0x77d   :  { %2347 = vmatprep.mubr.msk.f32.mxu0 %vm500_vm4, %v1384_v63 }
 0x77e   :  { %2348 = vmatmul.mubr.msk.f32.vlgmr.msra.gmra.mrb[12].mxu0 %vm500_vm4, %v2339_v60 }
 0x77f   :  { %2493 = vmatpush3.bf16.msra.mxu0 %v2490_v55  ;;  %v2342_v1 = vpop.f32.mrb[14].mxu1  ;;  %v2320_v2 = vpop.f32.mrb[10].mxu0 }
 0x780   :  { %v1394_v4 = vpop.f32.mrb[15].mxu1  ;;  %v1297_v5 = vpop.f32.mrb[11].mxu0 }
 0x781   :  { %2350 = vmatprep.mubr.msk.f32.mxu0 %vm500_vm4, %v1394_v4 }
 0x782   :  { %2351 = vmatmul.mubr.msk.f32.gmra.mrb[14].mxu0 %vm500_vm4, %v2342_v1 }
 0x783   :  { %2357 = vmatprep.mubr.msk.f32.mxu0 %vm500_vm4, %v1287_v0 }
 0x786   :  { %2358 = vmatmul.mubr.msk.f32.vlgmr.msra.gmra.mrb[12].mxu0 %vm500_vm4, %v2317_v62 }
 0x787   :  { %2360 = vmatprep.mubr.msk.f32.mxu0 %vm500_vm4, %v1297_v5 }
 0x78a   :  { %2361 = vmatmul.mubr.msk.f32.gmra.mrb[14].mxu0 %vm500_vm4, %v2320_v2 }
 0x859   :  { %v2359_v8 = vpop.f32.mrb[12].mxu0 }
 0x85a   :  { %v1582_v10 = vpop.f32.mrb[13].mxu0  ;;  %v1609_v37 = vadd.f32 %v2359_v8, %v2093_v7 }
 0x85b   :  { %v1608_v11 = vadd.f32 %v2093_v7, %v1582_v10 }
 0x85d   :  { %v2362_v61 = vpop.f32.mrb[14].mxu0  ;;  %2367 = vmatprep.mubr.msk.f32.mxu1 %vm500_vm4, %v1608_v11 }
 0x85e   :  { %v1592_v46 = vpop.f32.mrb[15].mxu0  ;;  %2368 = vmatmul.mubr.msk.f32.vlgmr.msra.gmra.mrb[16].mxu1 %vm500_vm4, %v1609_v37  ;;  %v1611_v14 = vadd.f32 %v2362_v61, %v2093_v7 }
 0x85f   :  { %v1610_v13 = vadd.f32 %v2093_v7, %v1592_v46 }
 0x861   :  { %2370 = vmatprep.mubr.msk.f32.mxu1 %vm500_vm4, %v1610_v13 }
 0x862   :  { %2371 = vmatmul.mubr.msk.f32.gmra.mrb[18].mxu1 %vm500_vm4, %v1611_v14 }
 0x863   :  { %2381 = vmatprep.mubr.msk.f32.mxu1 %vm2573_vm3, %v2574_v6 }
 0x931   :  { %v2369_v9 = vpop.f32.mrb[16].mxu1 }
 0x932   :  { %v1721_v12 = vmul.f32 %v2369_v9, %v2098_v16  ;;  %v1692_v41 = vpop.f32.mrb[17].mxu1 }
 0x933   :  { %v2499_v18 = vpack.c.bf16 %v2369_v9, %v1692_v41  ;;  %v1720_v19 = vmul.f32 %v2098_v16, %v1692_v41 }
 0x934   :  { %v1727_v20 = vsel %vm391_vm1, %v1721_v12, 0.0 }
 0x935   :  { %1728 = vadd.xlane.f32.xlu0 %v1727_v20  ;;  %v2372_v15 = vpop.f32.mrb[18].mxu1  ;;  %2501 = vmatpush3.bf16.xpose.msk.msra.mxu1 %vm3028_vm9, %v2499_v18  ;;  %v1724_v22 = vsel %vm391_vm1, %v1720_v19, 0.0 }
 0x936   :  { %2507 = vmatprep.subr.bf16.mxu0 %v2499_v18  ;;  %v1702_v6 = vpop.f32.mrb[19].mxu1  ;;  %2502 = vmatprep.subr.bf16.mxu1 %v2572_v3  ;;  %v1723_v23 = vmul.f32 %v2372_v15, %v2098_v16  ;;  %v1712_v3 = vld [vmem:[%s3104_s15] sm:$0x1] }
 0x937   :  { %v2503_v45 = vpack.c.bf16 %v2372_v15, %v1702_v6  ;;  %2509 = vmatpush3.bf16.msra.mxu0 %v2499_v18  ;;  %v1722_v21 = vmul.f32 %v2098_v16, %v1702_v6 }
 0x938   :  { %v1733_v25 = vsel %vm391_vm1, %v1723_v23, 0.0 }
 0x939   :  { %1725 = vadd.xlane.f32.xlu0 %v1724_v22  ;;  %2511 = vmatprep.subr.bf16.mxu0 %v2503_v45  ;;  %v1730_v24 = vsel %vm391_vm1, %v1722_v21, 0.0 }
 0x93b   :  { %2513 = vmatpush3.bf16.msra.mxu0 %v2503_v45 }
 0x93d   :  { %2505 = vmatpush3.bf16.xpose.msk.msra.mxu1 %vm3028_vm9, %v2503_v45  ;;  %1731 = vadd.xlane.f32.xlu0 %v1730_v24 }
 0x941   :  { %1734 = vadd.xlane.f32.xlu0 %v1733_v25 }
 0x944   :  { %2382 = vmatmul.mubr.msk.f32.vlgmr.msra.gmra.mrb[20].mxu1 %vm391_vm1, %v1712_v3 }
 0x9c2   :  { %v1729_v26 = vpop.xlane.xlu0 %1728 }
 0x9c6   :  { %v1726_v27 = vpop.xlane.xlu0 %1725 }
 0x9ca   :  { %v1732_v28 = vpop.xlane.xlu0 %1731 }
 0x9ce   :  { %v1735_v32 = vpop.xlane.xlu0 %1734 }
 0xa17   :  { %v1817_v29 = vpop.f32.mrb[20].mxu1 }
 0xa18   :  { %v1824_v30 = vrot.slane %v1817_v29, %v2834_v48  ;;  %v2383_v31 = vpop.f32.mrb[21].mxu1 }
 0xa1a   :  { %v1825_v33 = vadd.f32 %v1824_v30, %v1726_v27  ;;  %v1826_v34 = vadd.f32 %v1824_v30, %v1729_v26  ;;  %v1827_v35 = vadd.f32 %v1824_v30, %v1732_v28  ;;  %v1828_v47 = vadd.f32 %v1824_v30, %v1735_v32 }
 0xa1c   :  { %vm1829_vm3 = vcmp.gt.f32.partialorder %v1825_v33, 0.0  ;;  %vm1830_vm4 = vcmp.gt.f32.partialorder %v1826_v34, 0.0  ;;  %vm1831_vm11 = vcmp.gt.f32.partialorder %v1827_v35, 0.0  ;;  %vm1832_vm12 = vcmp.gt.f32.partialorder %v1828_v47, 0.0 }
 0xa1d   :  { %v1833_v36 = vmul.f32 0.2, %v1825_v33  ;;  %v1834_v38 = vmul.f32 0.2, %v1826_v34  ;;  %v1835_v39 = vmul.f32 0.2, %v1827_v35 }
 0xa1e   :  { %v1836_v40 = vmul.f32 0.2, %v1828_v47 }
 0xa1f   :  { %v1837_v42 = vsel %vm1829_vm3, %v1825_v33, %v1833_v36  ;;  %v1838_v43 = vsel %vm1830_vm4, %v1826_v34, %v1834_v38  ;;  %v1839_v44 = vsel %vm1831_vm11, %v1827_v35, %v1835_v39  ;;  %v2104_v36 = vld [vmem:[%s3105_s16] ss:$0 sm:$0xff] }
 0xa20   :  { %v1840_v49 = vsel %vm1832_vm12, %v1828_v47, %v1836_v40  ;;  %v1841_v48 = vsel %vm62_vm8, %v1837_v42, -1e+30  ;;  %v1842_v52 = vsel %vm63_vm6, %v1838_v43, -1e+30  ;;  %v1843_v53 = vsel %vm64_vm7, %v1839_v44, -1e+30 }
 0xa21   :  { %v1844_v55 = vsel %vm65_vm13, %v1840_v49, -1e+30  ;;  %v1845_v56 = vsel %vm622_vm14, %v1841_v48, -inf  ;;  %v1846_v57 = vsel %vm622_vm14, %v1842_v52, -inf  ;;  %v1847_v58 = vsel %vm622_vm14, %v1843_v53, -inf }
 0xa22   :  { %v1848_v60 = vsel %vm622_vm14, %v1844_v55, -inf  ;;  %v1849_v62 = vmax.f32 %v1845_v56, %v1846_v57 }
 0xa23   :  { %v1850_v63 = vmax.f32 %v1847_v58, %v1848_v60 }
 0xa25   :  { %v1851_v0 = vmax.f32 %v1849_v62, %v1850_v63 }
 0xa27   :  { %v1852_v1 = vrot.slane %v1851_v0, 4 }
 0xa29   :  { %v1853_v2 = vmax.f32 %v1851_v0, %v1852_v1 }
 0xa2b   :  { %v1854_v4 = vrot.slane %v1853_v2, 2 }
 0xa2d   :  { %v1855_v5 = vmax.f32 %v1853_v2, %v1854_v4 }
 0xa2f   :  { %v1856_v7 = vrot.slane %v1855_v5, 1 }
 0xa31   :  { %v1857_v8 = vmax.f32 %v1855_v5, %v1856_v7 }
 0xa33   :  { %v1858_v10 = vsub.f32 %v1841_v48, %v1857_v8  ;;  %v1859_v11 = vsub.f32 %v1842_v52, %v1857_v8  ;;  %v1860_v37 = vsub.f32 %v1843_v53, %v1857_v8  ;;  %v1861_v61 = vsub.f32 %v1844_v55, %v1857_v8 }
 0xa35   :  { %v1862_v46 = vmul.f32 1.442695, %v1858_v10  ;;  %v1864_v13 = vmul.f32 1.442695, %v1859_v11  ;;  %v1866_v14 = vmul.f32 1.442695, %v1860_v37 }
 0xa36   :  { %v1868_v16 = vmul.f32 1.442695, %v1861_v61 }
 0xa37   :  { %2560 = vpow2.f32 %v1862_v46 }
 0xa38   :  { %2562 = vpow2.f32 %v1864_v13 }
 0xa39   :  { %2564 = vpow2.f32 %v1866_v14 }
 0xa3a   :  { %2566 = vpow2.f32 %v1868_v16 }
 0xa41   :  { %v2561_v9 = vpop.eup %2560 }
 0xa42   :  { %v2563_v12 = vpop.eup %2562  ;;  %v1870_v41 = vmul.f32 %v2561_v9, %v2850_v54 }
 0xa43   :  { %v2565_v17 = vpop.eup %2564  ;;  %v1871_v18 = vmul.f32 %v2563_v12, %v2839_v50 }
 0xa44   :  { %v2567_v19 = vpop.eup %2566  ;;  %v1872_v20 = vmul.f32 %v2565_v17, %v2844_v51  ;;  %v1874_v15 = vsel %vm622_vm14, %v1870_v41, 0.0 }
 0xa45   :  { %v1873_v6 = vmul.f32 %v2567_v19, %v2855_v59  ;;  %v1875_v45 = vsel %vm622_vm14, %v1871_v18, 0.0 }
 0xa46   :  { %v1876_v21 = vadd.f32 %v1875_v45, %v1874_v15  ;;  %v1877_v22 = vsel %vm622_vm14, %v1872_v20, 0.0 }
 0xa47   :  { %v1879_v24 = vsel %vm622_vm14, %v1873_v6, 0.0 }
 0xa48   :  { %v1878_v23 = vadd.f32 %v1877_v22, %v1876_v21 }
 0xa4a   :  { %v1880_v25 = vadd.f32 %v1879_v24, %v1878_v23 }
 0xa4c   :  { %v1881_v54 = vrot.slane %v1880_v25, 4 }
 0xa4e   :  { %v1882_v3 = vadd.f32 %v1881_v54, %v1880_v25 }
 0xa50   :  { %v1883_v26 = vrot.slane %v1882_v3, 2 }
 0xa52   :  { %v1884_v50 = vadd.f32 %v1883_v26, %v1882_v3 }
 0xa54   :  { %v1885_v27 = vrot.slane %v1884_v50, 1 }
 0xa56   :  { %v1886_v28 = vadd.f32 %v1885_v27, %v1884_v50 }
 0xa58   :  { %v1887_v51 = vmax.f32 %v1886_v28, 1e-30 }
 0xa5a   :  { %2568 = vrcp.f32 %v1887_v51 }
 0xa64   :  { %v2569_v29 = vpop.eup %2568 }
 0xa65   :  { %v1889_v30 = vmul.f32 %v2569_v29, %v1870_v41  ;;  %v1890_v59 = vmul.f32 %v2569_v29, %v1871_v18  ;;  %v1891_v31 = vmul.f32 %v2569_v29, %v1872_v20  ;;  %v1892_v32 = vmul.f32 %v2569_v29, %v1873_v6 }
 0xa67   :  { %1899 = vxpose.xlu0.b32.start [1/4] (short) (narrow) %v1889_v30, 32 }
 0xa6b   :  { %1900 = vxpose.xlu0.b32.cont [2/4] (short) (narrow) %v1890_v59, 32 }
 0xa6f   :  { %1901 = vxpose.xlu0.b32.cont [3/4] (short) (narrow) %v1891_v31, 32 }
 0xa73   :  { %1902 = vxpose.xlu0.b32.end [4/4] (short) (narrow) %v1892_v32, 32 }
 0xae7   :  { %v1915_v33 = vpop.trf.xlu0 }
 0xae8   :  { %2392 = vmatprep.mubr.msk.f32.mxu0 %vm622_vm14, %v1915_v33 }
 0xaeb   :  { %v1916_v34 = vpop.trf.xlu0 }
 0xaec   :  { %2393 = vmatmul.mubr.msk.f32.vlgmr.msra.gmra.mrb[16].mxu0 %vm622_vm14, %v1916_v34 }
 0xaef   :  { %v1917_v35 = vpop.trf.xlu0 }
 0xaf0   :  { %2395 = vmatprep.mubr.msk.f32.mxu0 %vm622_vm14, %v1917_v35 }
 0xaf3   :  { %v1918_v47 = vpop.trf.xlu0 }
 0xaf4   :  { %2396 = vmatmul.mubr.msk.f32.gmra.mrb[18].mxu0 %vm622_vm14, %v1918_v47 }
 0xbbf   :  { %v2394_v38 = vpop.f32.mrb[16].mxu0 }
 0xbc0   :  { %v2015_v39 = vadd.f32 %v2394_v38, %v2104_v36  ;;  %v2009_v40 = vpop.f32.mrb[17].mxu0 }
 0xbc1   :  { %v2010_v42 = vadd.f32 %v2104_v36, %v2009_v40 }
 0xbc2   :  { %2029 = vst.msk [vmem:[%s3106_s17 + $0x8] sm:$0xff] %vm391_vm1, %v2015_v39 }
 0xbc3   :  { %2028 = vst.msk [vmem:[%s3106_s17] sm:$0xff] %vm391_vm1, %v2010_v42 }
 0xbc7   :  { %v2397_v43 = vpop.f32.mrb[18].mxu0 }
 0xbc8   :  { %v2025_v44 = vadd.f32 %v2397_v43, %v2104_v36  ;;  %v2019_v49 = vpop.f32.mrb[19].mxu0 }
 0xbc9   :  { %v2020_v48 = vadd.f32 %v2104_v36, %v2019_v49 }
 0xbca   :  { %2031 = vst.msk [vmem:[%s3106_s17 + $0x18] sm:$0xff] %vm391_vm1, %v2025_v44 }
 0xbcb   :  { %2030 = vst.msk [vmem:[%s3106_s17 + $0x10] sm:$0xff] %vm391_vm1, %v2020_v48 }

</bundles_post_ra>
